<compile_context>
chip_gen: v7x
topology: tpu7x:2x2x1
jax: 0.10.0
libtpu: 0.0.40
codegen_flags: <defaults>
</compile_context>

<pallas_src>
import numpy as np
import jax
import jax.numpy as jnp
from jax import lax
from jax.experimental import pallas as pl
from jax.experimental.pallas import tpu as pltpu

INPUT_SIZE = 1      # forward() views the input as (B, T, 1)
HIDDEN = 32
SEQ_LEN = 8
N_LABELS = 10
NUM_LAYERS = 2
LANE_PAD = 128      # class dim padded to a full lane group for dense stores
TILE_B_MAX = 256    # batch-tile ceiling (VMEM use stays < 2 MiB even here)


def _sigmoid(v):
    # sigmoid(v) = 0.5 * (1 + tanh(v/2)): exact, uses the EUP tanh path and
    # avoids a VALU divide sequence on the recurrent critical path.
    return 0.5 * (jnp.tanh(0.5 * v) + 1.0)


def make_gru_kernel(seq_len, hidden, n_labels, num_layers):
    H = hidden
    H3 = 3 * hidden
    n_gru_refs = num_layers * 4          # per layer: w_i, w_h, b_i, b_h

    def kernel(x_ref, *refs):
        gru_refs = refs[:n_gru_refs]
        fc1_w_ref, fc1_b_ref, fc2_w_ref, fc2_b_ref, out_ref = refs[n_gru_refs:]

        x = x_ref[...].astype(jnp.float32)                    # (TB, T)
        tb = x.shape[0]

        prev_seq = None        # list of (TB, H) outputs of the previous layer
        h = None
        for layer in range(num_layers):
            w_i = gru_refs[layer * 4 + 0][...]                 # (in, 3H)
            w_h = gru_refs[layer * 4 + 1][...]                 # (H, 3H)
            b_i = gru_refs[layer * 4 + 2][...]                 # (1, 3H)
            b_h = gru_refs[layer * 4 + 3][...]                 # (1, 3H)
            b_h_b = jnp.broadcast_to(b_h, (tb, H3))            # hoisted bcast

            # ---- input projections: no dependence on h -> hoisted ----------
            if layer == 0:
                # input_size == 1: W_ih @ x_t is a broadcast FMA per timestep.
                gi_list = [x[:, t:t + 1] * w_i + b_i for t in range(seq_len)]
            else:
                x_prev = jnp.concatenate(prev_seq, axis=0)     # (T*TB, H)
                gi_all = jnp.dot(x_prev, w_i,
                                 preferred_element_type=jnp.float32) + b_i
                gi_list = [gi_all[t * tb:(t + 1) * tb, :]
                           for t in range(seq_len)]

            keep_seq = layer < num_layers - 1   # top layer: only h_last needed
            h = jnp.zeros((tb, H), jnp.float32)
            new_seq = []
            for t in range(seq_len):
                gi = gi_list[t]
                # single fused (TB,H)x(H,3H) MXU push per timestep
                gh = jnp.dot(h, w_h,
                             preferred_element_type=jnp.float32) + b_h_b
                rz = _sigmoid(gi[:, 0:2 * H] + gh[:, 0:2 * H])
                r = rz[:, 0:H]
                z = rz[:, H:2 * H]
                n = jnp.tanh(gi[:, 2 * H:H3] + r * gh[:, 2 * H:H3])
                h = (1.0 - z) * n + z * h
                if keep_seq:
                    new_seq.append(h)
            prev_seq = new_seq

        # X = ht[:, -1, :] (last timestep of the top GRU layer) = h
        # fc1 + ReLU; Dropout(0.2) is the identity at inference time.
        h1 = jnp.maximum(
            jnp.dot(h, fc1_w_ref[...],
                    preferred_element_type=jnp.float32) + fc1_b_ref[...], 0.0)
        # fc2 (class dim zero-padded to LANE_PAD) + ReLU.
        logits = jnp.maximum(
            jnp.dot(h1, fc2_w_ref[...],
                    preferred_element_type=jnp.float32) + fc2_b_ref[...], 0.0)
        # Masked log_softmax over the 128 padded lanes: padded lanes get -1e30
        # so exp() underflows to 0 and they do not perturb the sum.
        lane = lax.broadcasted_iota(jnp.int32, logits.shape, 1)
        zl = jnp.where(lane < n_labels, logits, jnp.float32(-1e30))
        mx = jnp.max(zl, axis=-1, keepdims=True)
        shifted = zl - mx
        lse = jnp.log(jnp.sum(jnp.exp(shifted), axis=-1, keepdims=True))
        out_ref[...] = (shifted - lse).astype(out_ref.dtype)

    return kernel


def split_gru_params(torch_params, num_layers, hidden, n_labels, lane_pad):
    """PyTorch-layout GRU/FC weights -> kernel layout: gate-fused transposed
    (in, 3H)/(H, 3H) matrices, 2-D biases, class dim padded to 128 lanes."""
    H = hidden
    args = []
    for l in range(num_layers):
        w_ih = np.asarray(torch_params[f"w_ih_{l}"], np.float32)   # (3H, in)
        w_hh = np.asarray(torch_params[f"w_hh_{l}"], np.float32)   # (3H, H)
        b_ih = np.asarray(torch_params[f"b_ih_{l}"], np.float32)   # (3H,)
        b_hh = np.asarray(torch_params[f"b_hh_{l}"], np.float32)   # (3H,)
        args += [w_ih.T.copy(),                  # (in, 3H)  gates [r|z|n]
                 w_hh.T.copy(),                  # (H, 3H)
                 b_ih.reshape(1, 3 * H).copy(),
                 b_hh.reshape(1, 3 * H).copy()]
    fc1_w = np.asarray(torch_params["fc1_w"], np.float32).T.copy()  # (H, H)
    fc1_b = np.asarray(torch_params["fc1_b"], np.float32).reshape(1, H)
    fc2_w = np.zeros((H, lane_pad), np.float32)
    fc2_w[:, :n_labels] = np.asarray(torch_params["fc2_w"], np.float32).T
    fc2_b = np.zeros((1, lane_pad), np.float32)
    fc2_b[0, :n_labels] = np.asarray(torch_params["fc2_b"], np.float32)
    args += [fc1_w, fc1_b, fc2_w, fc2_b]
    return [jnp.asarray(a) for a in args]


def _pick_tile_b(batch, max_tile=TILE_B_MAX):
    """Largest sublane-aligned batch tile <= max_tile, keeping >=2 grid steps
    when the (padded) batch allows it so both v7x TensorCores get work."""
    b8 = ((batch + 7) // 8) * 8
    if b8 <= 8:
        return 8
    if b8 <= 2 * max_tile:
        return max(8, ((b8 // 2 + 7) // 8) * 8)
    return max_tile


def nlayer_gru2_forward(x, weight_args, *, num_layers=NUM_LAYERS,
                        hidden=HIDDEN, n_labels=N_LABELS,
                        lane_pad=LANE_PAD, tile_b=None):
    x = x.astype(jnp.float32)
    B, T = x.shape
    if tile_b is None:
        tile_b = _pick_tile_b(B)
    n_tiles = pl.cdiv(B, tile_b)
    b_pad = n_tiles * tile_b
    if b_pad != B:                       # remainder tile: pad, slice off below
        x = jnp.pad(x, ((0, b_pad - B), (0, 0)))

    kernel = make_gru_kernel(T, hidden, n_labels, num_layers)

    x_spec = pl.BlockSpec((tile_b, T), lambda i: (i, 0))
    # Weights: full-array blocks with constant index maps -> fetched once and
    # kept VMEM-resident across the batch grid (no per-step re-DMA).
    w_specs = [pl.BlockSpec(a.shape, lambda i: (0, 0)) for a in weight_args]
    out_spec = pl.BlockSpec((tile_b, lane_pad), lambda i: (i, 0))

    H = hidden
    weight_bytes = sum(int(np.prod(a.shape)) * 4 for a in weight_args)
    flops = b_pad * (T * num_layers * 2 * H * 3 * H          # recurrent dots
                     + (num_layers - 1) * T * 2 * H * 3 * H  # hoisted gi dots
                     + 2 * H * H + 2 * H * lane_pad)         # fc1 + fc2
    transcendentals = b_pad * (T * num_layers * 3 * H + lane_pad + 1)
    bytes_accessed = int(x.size) * 4 + weight_bytes + b_pad * lane_pad * 4

    out = pl.pallas_call(
        kernel,
        out_shape=jax.ShapeDtypeStruct((b_pad, lane_pad), jnp.float32),
        grid=(n_tiles,),
        in_specs=[x_spec] + w_specs,
        out_specs=out_spec,
        compiler_params=pltpu.CompilerParams(
            dimension_semantics=("parallel",),
            vmem_limit_bytes=32 * 1024 * 1024),
        cost_estimate=pl.CostEstimate(
            flops=int(flops),
            transcendentals=int(transcendentals),
            bytes_accessed=int(bytes_accessed)),
    )(x, *weight_args)
    return out[:B, :n_labels]


def reference_forward(x, torch_params, num_layers, hidden, n_labels):
    """Pure-JAX replica of the PyTorch NLayerGRU2 forward (eval mode)."""
    hp = jax.lax.Precision.HIGHEST
    B, T = x.shape
    H = hidden
    outs = x.astype(jnp.float32)[:, :, None]                  # (B, T, 1)
    for l in range(num_layers):
        w_ih = jnp.asarray(torch_params[f"w_ih_{l}"])
        w_hh = jnp.asarray(torch_params[f"w_hh_{l}"])
        b_ih = jnp.asarray(torch_params[f"b_ih_{l}"])
        b_hh = jnp.asarray(torch_params[f"b_hh_{l}"])
        h = jnp.zeros((B, H), jnp.float32)
        layer_out = []
        for t in range(T):
            xt = outs[:, t, :]
            gi = jnp.dot(xt, w_ih.T, precision=hp) + b_ih
            gh = jnp.dot(h, w_hh.T, precision=hp) + b_hh
            i_r, i_z, i_n = jnp.split(gi, 3, axis=1)
            h_r, h_z, h_n = jnp.split(gh, 3, axis=1)
            r = jax.nn.sigmoid(i_r + h_r)
            z = jax.nn.sigmoid(i_z + h_z)
            n = jnp.tanh(i_n + r * h_n)
            h = (1.0 - z) * n + z * h
            layer_out.append(h)
        outs = jnp.stack(layer_out, axis=1)                   # (B, T, H)
    X = outs[:, -1, :]
    X = jax.nn.relu(jnp.dot(X, jnp.asarray(torch_params["fc1_w"]).T,
                            precision=hp) + jnp.asarray(torch_params["fc1_b"]))
    X = jax.nn.relu(jnp.dot(X, jnp.asarray(torch_params["fc2_w"]).T,
                            precision=hp) + jnp.asarray(torch_params["fc2_b"]))
    return jax.nn.log_softmax(X, axis=1)


if __name__ == "__main__":
    key = jax.random.PRNGKey(0)
    ks = list(jax.random.split(key, NUM_LAYERS * 4 + 5))
    torch_params = {}
    k = 0
    scale = 1.0 / np.sqrt(HIDDEN)
    for l in range(NUM_LAYERS):
        in_dim = INPUT_SIZE if l == 0 else HIDDEN
        torch_params[f"w_ih_{l}"] = jax.random.uniform(
            ks[k], (3 * HIDDEN, in_dim), jnp.float32, -scale, scale); k += 1
        torch_params[f"w_hh_{l}"] = jax.random.uniform(
            ks[k], (3 * HIDDEN, HIDDEN), jnp.float32, -scale, scale); k += 1
        torch_params[f"b_ih_{l}"] = jax.random.uniform(
            ks[k], (3 * HIDDEN,), jnp.float32, -scale, scale); k += 1
        torch_params[f"b_hh_{l}"] = jax.random.uniform(
            ks[k], (3 * HIDDEN,), jnp.float32, -scale, scale); k += 1
    torch_params["fc1_w"] = jax.random.uniform(
        ks[k], (HIDDEN, HIDDEN), jnp.float32, -0.2, 0.2); k += 1
    torch_params["fc1_b"] = jax.random.uniform(
        ks[k], (HIDDEN,), jnp.float32, -0.2, 0.2); k += 1
    torch_params["fc2_w"] = jax.random.uniform(
        ks[k], (N_LABELS, HIDDEN), jnp.float32, -0.2, 0.2); k += 1
    torch_params["fc2_b"] = jax.random.uniform(
        ks[k], (N_LABELS,), jnp.float32, -0.2, 0.2); k += 1

    batch = 16
    x = jax.random.normal(ks[k], (batch, SEQ_LEN), jnp.float32)

    weight_args = split_gru_params(torch_params, NUM_LAYERS, HIDDEN,
                                   N_LABELS, LANE_PAD)
    out = jax.block_until_ready(nlayer_gru2_forward(x, weight_args))
    ref = jax.block_until_ready(
        reference_forward(x, torch_params, NUM_LAYERS, HIDDEN, N_LABELS))

    assert out.shape == (batch, N_LABELS)
    err = float(np.max(np.abs(np.asarray(out) - np.asarray(ref))))
    if not np.allclose(np.asarray(out), np.asarray(ref), atol=5e-3, rtol=5e-3):
        raise AssertionError(f"Pallas kernel mismatch, max abs diff {err}")
    print("KERNEL_OK")
</pallas_src>

<mosaic_0001>
module attributes {stable_mosaic.version = 11 : i64} {
  func.func @kernel(%arg0: i32, %arg1: memref<8x8xf32, #tpu.memory_space<vmem>>, %arg2: memref<1x96xf32, #tpu.memory_space<vmem>>, %arg3: memref<32x96xf32, #tpu.memory_space<vmem>>, %arg4: memref<1x96xf32, #tpu.memory_space<vmem>>, %arg5: memref<1x96xf32, #tpu.memory_space<vmem>>, %arg6: memref<32x96xf32, #tpu.memory_space<vmem>>, %arg7: memref<32x96xf32, #tpu.memory_space<vmem>>, %arg8: memref<1x96xf32, #tpu.memory_space<vmem>>, %arg9: memref<1x96xf32, #tpu.memory_space<vmem>>, %arg10: memref<32x32xf32, #tpu.memory_space<vmem>>, %arg11: memref<1x32xf32, #tpu.memory_space<vmem>>, %arg12: memref<32x128xf32, #tpu.memory_space<vmem>>, %arg13: memref<1x128xf32, #tpu.memory_space<vmem>>, %arg14: memref<8x128xf32, #tpu.memory_space<vmem>>) attributes {dimension_semantics = [#tpu.dimension_semantics<parallel>], iteration_bounds = array<i64: 2>, scalar_prefetch = 0 : i64, scratch_operands = 0 : i64, tpu.core_type = #tpu.core_type<tc>, window_params = [{transform_indices = @transform_0, window_bounds = array<i64: 8, 8>}, {pipeline_mode = #tpu.pipeline_mode<synchronous>, transform_indices = @transform_1, window_bounds = array<i64: 1, 96>}, {pipeline_mode = #tpu.pipeline_mode<synchronous>, transform_indices = @transform_2, window_bounds = array<i64: 32, 96>}, {pipeline_mode = #tpu.pipeline_mode<synchronous>, transform_indices = @transform_3, window_bounds = array<i64: 1, 96>}, {pipeline_mode = #tpu.pipeline_mode<synchronous>, transform_indices = @transform_4, window_bounds = array<i64: 1, 96>}, {pipeline_mode = #tpu.pipeline_mode<synchronous>, transform_indices = @transform_5, window_bounds = array<i64: 32, 96>}, {pipeline_mode = #tpu.pipeline_mode<synchronous>, transform_indices = @transform_6, window_bounds = array<i64: 32, 96>}, {pipeline_mode = #tpu.pipeline_mode<synchronous>, transform_indices = @transform_7, window_bounds = array<i64: 1, 96>}, {pipeline_mode = #tpu.pipeline_mode<synchronous>, transform_indices = @transform_8, window_bounds = array<i64: 1, 96>}, {pipeline_mode = #tpu.pipeline_mode<synchronous>, transform_indices = @transform_9, window_bounds = array<i64: 32, 32>}, {pipeline_mode = #tpu.pipeline_mode<synchronous>, transform_indices = @transform_10, window_bounds = array<i64: 1, 32>}, {pipeline_mode = #tpu.pipeline_mode<synchronous>, transform_indices = @transform_11, window_bounds = array<i64: 32, 128>}, {pipeline_mode = #tpu.pipeline_mode<synchronous>, transform_indices = @transform_12, window_bounds = array<i64: 1, 128>}, {transform_indices = @transform_13, window_bounds = array<i64: 8, 128>}]} {
    %c0 = arith.constant 0 : index
    %c0_0 = arith.constant 0 : index
    %0 = vector.load %arg1[%c0, %c0_0] : memref<8x8xf32, #tpu.memory_space<vmem>>, vector<8x8xf32>
    %c0_1 = arith.constant 0 : index
    %c0_2 = arith.constant 0 : index
    %1 = vector.load %arg2[%c0_1, %c0_2] : memref<1x96xf32, #tpu.memory_space<vmem>>, vector<1x96xf32>
    %c0_3 = arith.constant 0 : index
    %c0_4 = arith.constant 0 : index
    %2 = vector.load %arg3[%c0_3, %c0_4] : memref<32x96xf32, #tpu.memory_space<vmem>>, vector<32x96xf32>
    %c0_5 = arith.constant 0 : index
    %c0_6 = arith.constant 0 : index
    %3 = vector.load %arg4[%c0_5, %c0_6] : memref<1x96xf32, #tpu.memory_space<vmem>>, vector<1x96xf32>
    %c0_7 = arith.constant 0 : index
    %c0_8 = arith.constant 0 : index
    %4 = vector.load %arg5[%c0_7, %c0_8] : memref<1x96xf32, #tpu.memory_space<vmem>>, vector<1x96xf32>
    %5 = vector.shape_cast %4 : vector<1x96xf32> to vector<1x96xf32>
    %6 = vector.broadcast %5 : vector<1x96xf32> to vector<8x96xf32>
    %7 = vector.extract_strided_slice %0 {offsets = [0, 0], sizes = [8, 1], strides = [1, 1]} : vector<8x8xf32> to vector<8x1xf32>
    %8 = vector.broadcast %7 : vector<8x1xf32> to vector<8x96xf32>
    %9 = vector.broadcast %1 : vector<1x96xf32> to vector<8x96xf32>
    %10 = arith.mulf %8, %9 : vector<8x96xf32>
    %11 = vector.broadcast %3 : vector<1x96xf32> to vector<8x96xf32>
    %12 = arith.addf %10, %11 : vector<8x96xf32>
    %13 = vector.extract_strided_slice %0 {offsets = [0, 1], sizes = [8, 1], strides = [1, 1]} : vector<8x8xf32> to vector<8x1xf32>
    %14 = vector.broadcast %13 : vector<8x1xf32> to vector<8x96xf32>
    %15 = vector.broadcast %1 : vector<1x96xf32> to vector<8x96xf32>
    %16 = arith.mulf %14, %15 : vector<8x96xf32>
    %17 = vector.broadcast %3 : vector<1x96xf32> to vector<8x96xf32>
    %18 = arith.addf %16, %17 : vector<8x96xf32>
    %19 = vector.extract_strided_slice %0 {offsets = [0, 2], sizes = [8, 1], strides = [1, 1]} : vector<8x8xf32> to vector<8x1xf32>
    %20 = vector.broadcast %19 : vector<8x1xf32> to vector<8x96xf32>
    %21 = vector.broadcast %1 : vector<1x96xf32> to vector<8x96xf32>
    %22 = arith.mulf %20, %21 : vector<8x96xf32>
    %23 = vector.broadcast %3 : vector<1x96xf32> to vector<8x96xf32>
    %24 = arith.addf %22, %23 : vector<8x96xf32>
    %25 = vector.extract_strided_slice %0 {offsets = [0, 3], sizes = [8, 1], strides = [1, 1]} : vector<8x8xf32> to vector<8x1xf32>
    %26 = vector.broadcast %25 : vector<8x1xf32> to vector<8x96xf32>
    %27 = vector.broadcast %1 : vector<1x96xf32> to vector<8x96xf32>
    %28 = arith.mulf %26, %27 : vector<8x96xf32>
    %29 = vector.broadcast %3 : vector<1x96xf32> to vector<8x96xf32>
    %30 = arith.addf %28, %29 : vector<8x96xf32>
    %31 = vector.extract_strided_slice %0 {offsets = [0, 4], sizes = [8, 1], strides = [1, 1]} : vector<8x8xf32> to vector<8x1xf32>
    %32 = vector.broadcast %31 : vector<8x1xf32> to vector<8x96xf32>
    %33 = vector.broadcast %1 : vector<1x96xf32> to vector<8x96xf32>
    %34 = arith.mulf %32, %33 : vector<8x96xf32>
    %35 = vector.broadcast %3 : vector<1x96xf32> to vector<8x96xf32>
    %36 = arith.addf %34, %35 : vector<8x96xf32>
    %37 = vector.extract_strided_slice %0 {offsets = [0, 5], sizes = [8, 1], strides = [1, 1]} : vector<8x8xf32> to vector<8x1xf32>
    %38 = vector.broadcast %37 : vector<8x1xf32> to vector<8x96xf32>
    %39 = vector.broadcast %1 : vector<1x96xf32> to vector<8x96xf32>
    %40 = arith.mulf %38, %39 : vector<8x96xf32>
    %41 = vector.broadcast %3 : vector<1x96xf32> to vector<8x96xf32>
    %42 = arith.addf %40, %41 : vector<8x96xf32>
    %43 = vector.extract_strided_slice %0 {offsets = [0, 6], sizes = [8, 1], strides = [1, 1]} : vector<8x8xf32> to vector<8x1xf32>
    %44 = vector.broadcast %43 : vector<8x1xf32> to vector<8x96xf32>
    %45 = vector.broadcast %1 : vector<1x96xf32> to vector<8x96xf32>
    %46 = arith.mulf %44, %45 : vector<8x96xf32>
    %47 = vector.broadcast %3 : vector<1x96xf32> to vector<8x96xf32>
    %48 = arith.addf %46, %47 : vector<8x96xf32>
    %49 = vector.extract_strided_slice %0 {offsets = [0, 7], sizes = [8, 1], strides = [1, 1]} : vector<8x8xf32> to vector<8x1xf32>
    %50 = vector.broadcast %49 : vector<8x1xf32> to vector<8x96xf32>
    %51 = vector.broadcast %1 : vector<1x96xf32> to vector<8x96xf32>
    %52 = arith.mulf %50, %51 : vector<8x96xf32>
    %53 = vector.broadcast %3 : vector<1x96xf32> to vector<8x96xf32>
    %54 = arith.addf %52, %53 : vector<8x96xf32>
    %cst = arith.constant 0.000000e+00 : f32
    %55 = vector.broadcast %cst : f32 to vector<8x32xf32>
    %cst_9 = arith.constant dense<0.000000e+00> : vector<8x96xf32>
    %56 = tpu.matmul %55, %2, %cst_9 {dimension_numbers = #tpu.dot_dimension_numbers<[1], [0], [0], [1], [0, 0, 1, 1], [], []>} : vector<8x32xf32>, vector<32x96xf32>, vector<8x96xf32> -> vector<8x96xf32>
    %57 = arith.addf %56, %6 : vector<8x96xf32>
    %58 = vector.extract_strided_slice %12 {offsets = [0, 0], sizes = [8, 64], strides = [1, 1]} : vector<8x96xf32> to vector<8x64xf32>
    %59 = vector.extract_strided_slice %57 {offsets = [0, 0], sizes = [8, 64], strides = [1, 1]} : vector<8x96xf32> to vector<8x64xf32>
    %60 = arith.addf %58, %59 : vector<8x64xf32>
    %cst_10 = arith.constant 5.000000e-01 : f32
    %61 = vector.broadcast %cst_10 : f32 to vector<8x64xf32>
    %62 = arith.mulf %61, %60 : vector<8x64xf32>
    %63 = math.tanh %62 : vector<8x64xf32>
    %cst_11 = arith.constant 1.000000e+00 : f32
    %64 = vector.broadcast %cst_11 : f32 to vector<8x64xf32>
    %65 = arith.addf %63, %64 : vector<8x64xf32>
    %cst_12 = arith.constant 5.000000e-01 : f32
    %66 = vector.broadcast %cst_12 : f32 to vector<8x64xf32>
    %67 = arith.mulf %66, %65 : vector<8x64xf32>
    %68 = vector.extract_strided_slice %67 {offsets = [0, 0], sizes = [8, 32], strides = [1, 1]} : vector<8x64xf32> to vector<8x32xf32>
    %69 = vector.extract_strided_slice %67 {offsets = [0, 32], sizes = [8, 32], strides = [1, 1]} : vector<8x64xf32> to vector<8x32xf32>
    %70 = vector.extract_strided_slice %12 {offsets = [0, 64], sizes = [8, 32], strides = [1, 1]} : vector<8x96xf32> to vector<8x32xf32>
    %71 = vector.extract_strided_slice %57 {offsets = [0, 64], sizes = [8, 32], strides = [1, 1]} : vector<8x96xf32> to vector<8x32xf32>
    %72 = arith.mulf %68, %71 : vector<8x32xf32>
    %73 = arith.addf %70, %72 : vector<8x32xf32>
    %74 = math.tanh %73 : vector<8x32xf32>
    %cst_13 = arith.constant 1.000000e+00 : f32
    %75 = vector.broadcast %cst_13 : f32 to vector<8x32xf32>
    %76 = arith.subf %75, %69 : vector<8x32xf32>
    %77 = arith.mulf %76, %74 : vector<8x32xf32>
    %78 = arith.mulf %69, %55 : vector<8x32xf32>
    %79 = arith.addf %77, %78 : vector<8x32xf32>
    %cst_14 = arith.constant dense<0.000000e+00> : vector<8x96xf32>
    %80 = tpu.matmul %79, %2, %cst_14 {dimension_numbers = #tpu.dot_dimension_numbers<[1], [0], [0], [1], [0, 0, 1, 1], [], []>} : vector<8x32xf32>, vector<32x96xf32>, vector<8x96xf32> -> vector<8x96xf32>
    %81 = arith.addf %80, %6 : vector<8x96xf32>
    %82 = vector.extract_strided_slice %18 {offsets = [0, 0], sizes = [8, 64], strides = [1, 1]} : vector<8x96xf32> to vector<8x64xf32>
    %83 = vector.extract_strided_slice %81 {offsets = [0, 0], sizes = [8, 64], strides = [1, 1]} : vector<8x96xf32> to vector<8x64xf32>
    %84 = arith.addf %82, %83 : vector<8x64xf32>
    %cst_15 = arith.constant 5.000000e-01 : f32
    %85 = vector.broadcast %cst_15 : f32 to vector<8x64xf32>
    %86 = arith.mulf %85, %84 : vector<8x64xf32>
    %87 = math.tanh %86 : vector<8x64xf32>
    %cst_16 = arith.constant 1.000000e+00 : f32
    %88 = vector.broadcast %cst_16 : f32 to vector<8x64xf32>
    %89 = arith.addf %87, %88 : vector<8x64xf32>
    %cst_17 = arith.constant 5.000000e-01 : f32
    %90 = vector.broadcast %cst_17 : f32 to vector<8x64xf32>
    %91 = arith.mulf %90, %89 : vector<8x64xf32>
    %92 = vector.extract_strided_slice %91 {offsets = [0, 0], sizes = [8, 32], strides = [1, 1]} : vector<8x64xf32> to vector<8x32xf32>
    %93 = vector.extract_strided_slice %91 {offsets = [0, 32], sizes = [8, 32], strides = [1, 1]} : vector<8x64xf32> to vector<8x32xf32>
    %94 = vector.extract_strided_slice %18 {offsets = [0, 64], sizes = [8, 32], strides = [1, 1]} : vector<8x96xf32> to vector<8x32xf32>
    %95 = vector.extract_strided_slice %81 {offsets = [0, 64], sizes = [8, 32], strides = [1, 1]} : vector<8x96xf32> to vector<8x32xf32>
    %96 = arith.mulf %92, %95 : vector<8x32xf32>
    %97 = arith.addf %94, %96 : vector<8x32xf32>
    %98 = math.tanh %97 : vector<8x32xf32>
    %cst_18 = arith.constant 1.000000e+00 : f32
    %99 = vector.broadcast %cst_18 : f32 to vector<8x32xf32>
    %100 = arith.subf %99, %93 : vector<8x32xf32>
    %101 = arith.mulf %100, %98 : vector<8x32xf32>
    %102 = arith.mulf %93, %79 : vector<8x32xf32>
    %103 = arith.addf %101, %102 : vector<8x32xf32>
    %cst_19 = arith.constant dense<0.000000e+00> : vector<8x96xf32>
    %104 = tpu.matmul %103, %2, %cst_19 {dimension_numbers = #tpu.dot_dimension_numbers<[1], [0], [0], [1], [0, 0, 1, 1], [], []>} : vector<8x32xf32>, vector<32x96xf32>, vector<8x96xf32> -> vector<8x96xf32>
    %105 = arith.addf %104, %6 : vector<8x96xf32>
    %106 = vector.extract_strided_slice %24 {offsets = [0, 0], sizes = [8, 64], strides = [1, 1]} : vector<8x96xf32> to vector<8x64xf32>
    %107 = vector.extract_strided_slice %105 {offsets = [0, 0], sizes = [8, 64], strides = [1, 1]} : vector<8x96xf32> to vector<8x64xf32>
    %108 = arith.addf %106, %107 : vector<8x64xf32>
    %cst_20 = arith.constant 5.000000e-01 : f32
    %109 = vector.broadcast %cst_20 : f32 to vector<8x64xf32>
    %110 = arith.mulf %109, %108 : vector<8x64xf32>
    %111 = math.tanh %110 : vector<8x64xf32>
    %cst_21 = arith.constant 1.000000e+00 : f32
    %112 = vector.broadcast %cst_21 : f32 to vector<8x64xf32>
    %113 = arith.addf %111, %112 : vector<8x64xf32>
    %cst_22 = arith.constant 5.000000e-01 : f32
    %114 = vector.broadcast %cst_22 : f32 to vector<8x64xf32>
    %115 = arith.mulf %114, %113 : vector<8x64xf32>
    %116 = vector.extract_strided_slice %115 {offsets = [0, 0], sizes = [8, 32], strides = [1, 1]} : vector<8x64xf32> to vector<8x32xf32>
    %117 = vector.extract_strided_slice %115 {offsets = [0, 32], sizes = [8, 32], strides = [1, 1]} : vector<8x64xf32> to vector<8x32xf32>
    %118 = vector.extract_strided_slice %24 {offsets = [0, 64], sizes = [8, 32], strides = [1, 1]} : vector<8x96xf32> to vector<8x32xf32>
    %119 = vector.extract_strided_slice %105 {offsets = [0, 64], sizes = [8, 32], strides = [1, 1]} : vector<8x96xf32> to vector<8x32xf32>
    %120 = arith.mulf %116, %119 : vector<8x32xf32>
    %121 = arith.addf %118, %120 : vector<8x32xf32>
    %122 = math.tanh %121 : vector<8x32xf32>
    %cst_23 = arith.constant 1.000000e+00 : f32
    %123 = vector.broadcast %cst_23 : f32 to vector<8x32xf32>
    %124 = arith.subf %123, %117 : vector<8x32xf32>
    %125 = arith.mulf %124, %122 : vector<8x32xf32>
    %126 = arith.mulf %117, %103 : vector<8x32xf32>
    %127 = arith.addf %125, %126 : vector<8x32xf32>
    %cst_24 = arith.constant dense<0.000000e+00> : vector<8x96xf32>
    %128 = tpu.matmul %127, %2, %cst_24 {dimension_numbers = #tpu.dot_dimension_numbers<[1], [0], [0], [1], [0, 0, 1, 1], [], []>} : vector<8x32xf32>, vector<32x96xf32>, vector<8x96xf32> -> vector<8x96xf32>
    %129 = arith.addf %128, %6 : vector<8x96xf32>
    %130 = vector.extract_strided_slice %30 {offsets = [0, 0], sizes = [8, 64], strides = [1, 1]} : vector<8x96xf32> to vector<8x64xf32>
    %131 = vector.extract_strided_slice %129 {offsets = [0, 0], sizes = [8, 64], strides = [1, 1]} : vector<8x96xf32> to vector<8x64xf32>
    %132 = arith.addf %130, %131 : vector<8x64xf32>
    %cst_25 = arith.constant 5.000000e-01 : f32
    %133 = vector.broadcast %cst_25 : f32 to vector<8x64xf32>
    %134 = arith.mulf %133, %132 : vector<8x64xf32>
    %135 = math.tanh %134 : vector<8x64xf32>
    %cst_26 = arith.constant 1.000000e+00 : f32
    %136 = vector.broadcast %cst_26 : f32 to vector<8x64xf32>
    %137 = arith.addf %135, %136 : vector<8x64xf32>
    %cst_27 = arith.constant 5.000000e-01 : f32
    %138 = vector.broadcast %cst_27 : f32 to vector<8x64xf32>
    %139 = arith.mulf %138, %137 : vector<8x64xf32>
    %140 = vector.extract_strided_slice %139 {offsets = [0, 0], sizes = [8, 32], strides = [1, 1]} : vector<8x64xf32> to vector<8x32xf32>
    %141 = vector.extract_strided_slice %139 {offsets = [0, 32], sizes = [8, 32], strides = [1, 1]} : vector<8x64xf32> to vector<8x32xf32>
    %142 = vector.extract_strided_slice %30 {offsets = [0, 64], sizes = [8, 32], strides = [1, 1]} : vector<8x96xf32> to vector<8x32xf32>
    %143 = vector.extract_strided_slice %129 {offsets = [0, 64], sizes = [8, 32], strides = [1, 1]} : vector<8x96xf32> to vector<8x32xf32>
    %144 = arith.mulf %140, %143 : vector<8x32xf32>
    %145 = arith.addf %142, %144 : vector<8x32xf32>
    %146 = math.tanh %145 : vector<8x32xf32>
    %cst_28 = arith.constant 1.000000e+00 : f32
    %147 = vector.broadcast %cst_28 : f32 to vector<8x32xf32>
    %148 = arith.subf %147, %141 : vector<8x32xf32>
    %149 = arith.mulf %148, %146 : vector<8x32xf32>
    %150 = arith.mulf %141, %127 : vector<8x32xf32>
    %151 = arith.addf %149, %150 : vector<8x32xf32>
    %cst_29 = arith.constant dense<0.000000e+00> : vector<8x96xf32>
    %152 = tpu.matmul %151, %2, %cst_29 {dimension_numbers = #tpu.dot_dimension_numbers<[1], [0], [0], [1], [0, 0, 1, 1], [], []>} : vector<8x32xf32>, vector<32x96xf32>, vector<8x96xf32> -> vector<8x96xf32>
    %153 = arith.addf %152, %6 : vector<8x96xf32>
    %154 = vector.extract_strided_slice %36 {offsets = [0, 0], sizes = [8, 64], strides = [1, 1]} : vector<8x96xf32> to vector<8x64xf32>
    %155 = vector.extract_strided_slice %153 {offsets = [0, 0], sizes = [8, 64], strides = [1, 1]} : vector<8x96xf32> to vector<8x64xf32>
    %156 = arith.addf %154, %155 : vector<8x64xf32>
    %cst_30 = arith.constant 5.000000e-01 : f32
    %157 = vector.broadcast %cst_30 : f32 to vector<8x64xf32>
    %158 = arith.mulf %157, %156 : vector<8x64xf32>
    %159 = math.tanh %158 : vector<8x64xf32>
    %cst_31 = arith.constant 1.000000e+00 : f32
    %160 = vector.broadcast %cst_31 : f32 to vector<8x64xf32>
    %161 = arith.addf %159, %160 : vector<8x64xf32>
    %cst_32 = arith.constant 5.000000e-01 : f32
    %162 = vector.broadcast %cst_32 : f32 to vector<8x64xf32>
    %163 = arith.mulf %162, %161 : vector<8x64xf32>
    %164 = vector.extract_strided_slice %163 {offsets = [0, 0], sizes = [8, 32], strides = [1, 1]} : vector<8x64xf32> to vector<8x32xf32>
    %165 = vector.extract_strided_slice %163 {offsets = [0, 32], sizes = [8, 32], strides = [1, 1]} : vector<8x64xf32> to vector<8x32xf32>
    %166 = vector.extract_strided_slice %36 {offsets = [0, 64], sizes = [8, 32], strides = [1, 1]} : vector<8x96xf32> to vector<8x32xf32>
    %167 = vector.extract_strided_slice %153 {offsets = [0, 64], sizes = [8, 32], strides = [1, 1]} : vector<8x96xf32> to vector<8x32xf32>
    %168 = arith.mulf %164, %167 : vector<8x32xf32>
    %169 = arith.addf %166, %168 : vector<8x32xf32>
    %170 = math.tanh %169 : vector<8x32xf32>
    %cst_33 = arith.constant 1.000000e+00 : f32
    %171 = vector.broadcast %cst_33 : f32 to vector<8x32xf32>
    %172 = arith.subf %171, %165 : vector<8x32xf32>
    %173 = arith.mulf %172, %170 : vector<8x32xf32>
    %174 = arith.mulf %165, %151 : vector<8x32xf32>
    %175 = arith.addf %173, %174 : vector<8x32xf32>
    %cst_34 = arith.constant dense<0.000000e+00> : vector<8x96xf32>
    %176 = tpu.matmul %175, %2, %cst_34 {dimension_numbers = #tpu.dot_dimension_numbers<[1], [0], [0], [1], [0, 0, 1, 1], [], []>} : vector<8x32xf32>, vector<32x96xf32>, vector<8x96xf32> -> vector<8x96xf32>
    %177 = arith.addf %176, %6 : vector<8x96xf32>
    %178 = vector.extract_strided_slice %42 {offsets = [0, 0], sizes = [8, 64], strides = [1, 1]} : vector<8x96xf32> to vector<8x64xf32>
    %179 = vector.extract_strided_slice %177 {offsets = [0, 0], sizes = [8, 64], strides = [1, 1]} : vector<8x96xf32> to vector<8x64xf32>
    %180 = arith.addf %178, %179 : vector<8x64xf32>
    %cst_35 = arith.constant 5.000000e-01 : f32
    %181 = vector.broadcast %cst_35 : f32 to vector<8x64xf32>
    %182 = arith.mulf %181, %180 : vector<8x64xf32>
    %183 = math.tanh %182 : vector<8x64xf32>
    %cst_36 = arith.constant 1.000000e+00 : f32
    %184 = vector.broadcast %cst_36 : f32 to vector<8x64xf32>
    %185 = arith.addf %183, %184 : vector<8x64xf32>
    %cst_37 = arith.constant 5.000000e-01 : f32
    %186 = vector.broadcast %cst_37 : f32 to vector<8x64xf32>
    %187 = arith.mulf %186, %185 : vector<8x64xf32>
    %188 = vector.extract_strided_slice %187 {offsets = [0, 0], sizes = [8, 32], strides = [1, 1]} : vector<8x64xf32> to vector<8x32xf32>
    %189 = vector.extract_strided_slice %187 {offsets = [0, 32], sizes = [8, 32], strides = [1, 1]} : vector<8x64xf32> to vector<8x32xf32>
    %190 = vector.extract_strided_slice %42 {offsets = [0, 64], sizes = [8, 32], strides = [1, 1]} : vector<8x96xf32> to vector<8x32xf32>
    %191 = vector.extract_strided_slice %177 {offsets = [0, 64], sizes = [8, 32], strides = [1, 1]} : vector<8x96xf32> to vector<8x32xf32>
    %192 = arith.mulf %188, %191 : vector<8x32xf32>
    %193 = arith.addf %190, %192 : vector<8x32xf32>
    %194 = math.tanh %193 : vector<8x32xf32>
    %cst_38 = arith.constant 1.000000e+00 : f32
    %195 = vector.broadcast %cst_38 : f32 to vector<8x32xf32>
    %196 = arith.subf %195, %189 : vector<8x32xf32>
    %197 = arith.mulf %196, %194 : vector<8x32xf32>
    %198 = arith.mulf %189, %175 : vector<8x32xf32>
    %199 = arith.addf %197, %198 : vector<8x32xf32>
    %cst_39 = arith.constant dense<0.000000e+00> : vector<8x96xf32>
    %200 = tpu.matmul %199, %2, %cst_39 {dimension_numbers = #tpu.dot_dimension_numbers<[1], [0], [0], [1], [0, 0, 1, 1], [], []>} : vector<8x32xf32>, vector<32x96xf32>, vector<8x96xf32> -> vector<8x96xf32>
    %201 = arith.addf %200, %6 : vector<8x96xf32>
    %202 = vector.extract_strided_slice %48 {offsets = [0, 0], sizes = [8, 64], strides = [1, 1]} : vector<8x96xf32> to vector<8x64xf32>
    %203 = vector.extract_strided_slice %201 {offsets = [0, 0], sizes = [8, 64], strides = [1, 1]} : vector<8x96xf32> to vector<8x64xf32>
    %204 = arith.addf %202, %203 : vector<8x64xf32>
    %cst_40 = arith.constant 5.000000e-01 : f32
    %205 = vector.broadcast %cst_40 : f32 to vector<8x64xf32>
    %206 = arith.mulf %205, %204 : vector<8x64xf32>
    %207 = math.tanh %206 : vector<8x64xf32>
    %cst_41 = arith.constant 1.000000e+00 : f32
    %208 = vector.broadcast %cst_41 : f32 to vector<8x64xf32>
    %209 = arith.addf %207, %208 : vector<8x64xf32>
    %cst_42 = arith.constant 5.000000e-01 : f32
    %210 = vector.broadcast %cst_42 : f32 to vector<8x64xf32>
    %211 = arith.mulf %210, %209 : vector<8x64xf32>
    %212 = vector.extract_strided_slice %211 {offsets = [0, 0], sizes = [8, 32], strides = [1, 1]} : vector<8x64xf32> to vector<8x32xf32>
    %213 = vector.extract_strided_slice %211 {offsets = [0, 32], sizes = [8, 32], strides = [1, 1]} : vector<8x64xf32> to vector<8x32xf32>
    %214 = vector.extract_strided_slice %48 {offsets = [0, 64], sizes = [8, 32], strides = [1, 1]} : vector<8x96xf32> to vector<8x32xf32>
    %215 = vector.extract_strided_slice %201 {offsets = [0, 64], sizes = [8, 32], strides = [1, 1]} : vector<8x96xf32> to vector<8x32xf32>
    %216 = arith.mulf %212, %215 : vector<8x32xf32>
    %217 = arith.addf %214, %216 : vector<8x32xf32>
    %218 = math.tanh %217 : vector<8x32xf32>
    %cst_43 = arith.constant 1.000000e+00 : f32
    %219 = vector.broadcast %cst_43 : f32 to vector<8x32xf32>
    %220 = arith.subf %219, %213 : vector<8x32xf32>
    %221 = arith.mulf %220, %218 : vector<8x32xf32>
    %222 = arith.mulf %213, %199 : vector<8x32xf32>
    %223 = arith.addf %221, %222 : vector<8x32xf32>
    %cst_44 = arith.constant dense<0.000000e+00> : vector<8x96xf32>
    %224 = tpu.matmul %223, %2, %cst_44 {dimension_numbers = #tpu.dot_dimension_numbers<[1], [0], [0], [1], [0, 0, 1, 1], [], []>} : vector<8x32xf32>, vector<32x96xf32>, vector<8x96xf32> -> vector<8x96xf32>
    %225 = arith.addf %224, %6 : vector<8x96xf32>
    %226 = vector.extract_strided_slice %54 {offsets = [0, 0], sizes = [8, 64], strides = [1, 1]} : vector<8x96xf32> to vector<8x64xf32>
    %227 = vector.extract_strided_slice %225 {offsets = [0, 0], sizes = [8, 64], strides = [1, 1]} : vector<8x96xf32> to vector<8x64xf32>
    %228 = arith.addf %226, %227 : vector<8x64xf32>
    %cst_45 = arith.constant 5.000000e-01 : f32
    %229 = vector.broadcast %cst_45 : f32 to vector<8x64xf32>
    %230 = arith.mulf %229, %228 : vector<8x64xf32>
    %231 = math.tanh %230 : vector<8x64xf32>
    %cst_46 = arith.constant 1.000000e+00 : f32
    %232 = vector.broadcast %cst_46 : f32 to vector<8x64xf32>
    %233 = arith.addf %231, %232 : vector<8x64xf32>
    %cst_47 = arith.constant 5.000000e-01 : f32
    %234 = vector.broadcast %cst_47 : f32 to vector<8x64xf32>
    %235 = arith.mulf %234, %233 : vector<8x64xf32>
    %236 = vector.extract_strided_slice %235 {offsets = [0, 0], sizes = [8, 32], strides = [1, 1]} : vector<8x64xf32> to vector<8x32xf32>
    %237 = vector.extract_strided_slice %235 {offsets = [0, 32], sizes = [8, 32], strides = [1, 1]} : vector<8x64xf32> to vector<8x32xf32>
    %238 = vector.extract_strided_slice %54 {offsets = [0, 64], sizes = [8, 32], strides = [1, 1]} : vector<8x96xf32> to vector<8x32xf32>
    %239 = vector.extract_strided_slice %225 {offsets = [0, 64], sizes = [8, 32], strides = [1, 1]} : vector<8x96xf32> to vector<8x32xf32>
    %240 = arith.mulf %236, %239 : vector<8x32xf32>
    %241 = arith.addf %238, %240 : vector<8x32xf32>
    %242 = math.tanh %241 : vector<8x32xf32>
    %cst_48 = arith.constant 1.000000e+00 : f32
    %243 = vector.broadcast %cst_48 : f32 to vector<8x32xf32>
    %244 = arith.subf %243, %237 : vector<8x32xf32>
    %245 = arith.mulf %244, %242 : vector<8x32xf32>
    %246 = arith.mulf %237, %223 : vector<8x32xf32>
    %247 = arith.addf %245, %246 : vector<8x32xf32>
    %c0_49 = arith.constant 0 : index
    %c0_50 = arith.constant 0 : index
    %248 = vector.load %arg6[%c0_49, %c0_50] : memref<32x96xf32, #tpu.memory_space<vmem>>, vector<32x96xf32>
    %c0_51 = arith.constant 0 : index
    %c0_52 = arith.constant 0 : index
    %249 = vector.load %arg7[%c0_51, %c0_52] : memref<32x96xf32, #tpu.memory_space<vmem>>, vector<32x96xf32>
    %c0_53 = arith.constant 0 : index
    %c0_54 = arith.constant 0 : index
    %250 = vector.load %arg8[%c0_53, %c0_54] : memref<1x96xf32, #tpu.memory_space<vmem>>, vector<1x96xf32>
    %c0_55 = arith.constant 0 : index
    %c0_56 = arith.constant 0 : index
    %251 = vector.load %arg9[%c0_55, %c0_56] : memref<1x96xf32, #tpu.memory_space<vmem>>, vector<1x96xf32>
    %252 = vector.shape_cast %251 : vector<1x96xf32> to vector<1x96xf32>
    %253 = vector.broadcast %252 : vector<1x96xf32> to vector<8x96xf32>
    %254 = tpu.concatenate %79, %103, %127, %151, %175, %199, %223, %247 in 0 : vector<8x32xf32>, vector<8x32xf32>, vector<8x32xf32>, vector<8x32xf32>, vector<8x32xf32>, vector<8x32xf32>, vector<8x32xf32>, vector<8x32xf32> -> vector<64x32xf32>
    %cst_57 = arith.constant dense<0.000000e+00> : vector<64x96xf32>
    %255 = tpu.matmul %254, %248, %cst_57 {dimension_numbers = #tpu.dot_dimension_numbers<[1], [0], [0], [1], [0, 0, 1, 1], [], []>} : vector<64x32xf32>, vector<32x96xf32>, vector<64x96xf32> -> vector<64x96xf32>
    %256 = vector.broadcast %250 : vector<1x96xf32> to vector<64x96xf32>
    %257 = arith.addf %255, %256 : vector<64x96xf32>
    %258 = vector.extract_strided_slice %257 {offsets = [0, 0], sizes = [8, 96], strides = [1, 1]} : vector<64x96xf32> to vector<8x96xf32>
    %259 = vector.extract_strided_slice %257 {offsets = [8, 0], sizes = [8, 96], strides = [1, 1]} : vector<64x96xf32> to vector<8x96xf32>
    %260 = vector.extract_strided_slice %257 {offsets = [16, 0], sizes = [8, 96], strides = [1, 1]} : vector<64x96xf32> to vector<8x96xf32>
    %261 = vector.extract_strided_slice %257 {offsets = [24, 0], sizes = [8, 96], strides = [1, 1]} : vector<64x96xf32> to vector<8x96xf32>
    %262 = vector.extract_strided_slice %257 {offsets = [32, 0], sizes = [8, 96], strides = [1, 1]} : vector<64x96xf32> to vector<8x96xf32>
    %263 = vector.extract_strided_slice %257 {offsets = [40, 0], sizes = [8, 96], strides = [1, 1]} : vector<64x96xf32> to vector<8x96xf32>
    %264 = vector.extract_strided_slice %257 {offsets = [48, 0], sizes = [8, 96], strides = [1, 1]} : vector<64x96xf32> to vector<8x96xf32>
    %265 = vector.extract_strided_slice %257 {offsets = [56, 0], sizes = [8, 96], strides = [1, 1]} : vector<64x96xf32> to vector<8x96xf32>
    %cst_58 = arith.constant 0.000000e+00 : f32
    %266 = vector.broadcast %cst_58 : f32 to vector<8x32xf32>
    %cst_59 = arith.constant dense<0.000000e+00> : vector<8x96xf32>
    %267 = tpu.matmul %266, %249, %cst_59 {dimension_numbers = #tpu.dot_dimension_numbers<[1], [0], [0], [1], [0, 0, 1, 1], [], []>} : vector<8x32xf32>, vector<32x96xf32>, vector<8x96xf32> -> vector<8x96xf32>
    %268 = arith.addf %267, %253 : vector<8x96xf32>
    %269 = vector.extract_strided_slice %258 {offsets = [0, 0], sizes = [8, 64], strides = [1, 1]} : vector<8x96xf32> to vector<8x64xf32>
    %270 = vector.extract_strided_slice %268 {offsets = [0, 0], sizes = [8, 64], strides = [1, 1]} : vector<8x96xf32> to vector<8x64xf32>
    %271 = arith.addf %269, %270 : vector<8x64xf32>
    %cst_60 = arith.constant 5.000000e-01 : f32
    %272 = vector.broadcast %cst_60 : f32 to vector<8x64xf32>
    %273 = arith.mulf %272, %271 : vector<8x64xf32>
    %274 = math.tanh %273 : vector<8x64xf32>
    %cst_61 = arith.constant 1.000000e+00 : f32
    %275 = vector.broadcast %cst_61 : f32 to vector<8x64xf32>
    %276 = arith.addf %274, %275 : vector<8x64xf32>
    %cst_62 = arith.constant 5.000000e-01 : f32
    %277 = vector.broadcast %cst_62 : f32 to vector<8x64xf32>
    %278 = arith.mulf %277, %276 : vector<8x64xf32>
    %279 = vector.extract_strided_slice %278 {offsets = [0, 0], sizes = [8, 32], strides = [1, 1]} : vector<8x64xf32> to vector<8x32xf32>
    %280 = vector.extract_strided_slice %278 {offsets = [0, 32], sizes = [8, 32], strides = [1, 1]} : vector<8x64xf32> to vector<8x32xf32>
    %281 = vector.extract_strided_slice %258 {offsets = [0, 64], sizes = [8, 32], strides = [1, 1]} : vector<8x96xf32> to vector<8x32xf32>
    %282 = vector.extract_strided_slice %268 {offsets = [0, 64], sizes = [8, 32], strides = [1, 1]} : vector<8x96xf32> to vector<8x32xf32>
    %283 = arith.mulf %279, %282 : vector<8x32xf32>
    %284 = arith.addf %281, %283 : vector<8x32xf32>
    %285 = math.tanh %284 : vector<8x32xf32>
    %cst_63 = arith.constant 1.000000e+00 : f32
    %286 = vector.broadcast %cst_63 : f32 to vector<8x32xf32>
    %287 = arith.subf %286, %280 : vector<8x32xf32>
    %288 = arith.mulf %287, %285 : vector<8x32xf32>
    %289 = arith.mulf %280, %266 : vector<8x32xf32>
    %290 = arith.addf %288, %289 : vector<8x32xf32>
    %cst_64 = arith.constant dense<0.000000e+00> : vector<8x96xf32>
    %291 = tpu.matmul %290, %249, %cst_64 {dimension_numbers = #tpu.dot_dimension_numbers<[1], [0], [0], [1], [0, 0, 1, 1], [], []>} : vector<8x32xf32>, vector<32x96xf32>, vector<8x96xf32> -> vector<8x96xf32>
    %292 = arith.addf %291, %253 : vector<8x96xf32>
    %293 = vector.extract_strided_slice %259 {offsets = [0, 0], sizes = [8, 64], strides = [1, 1]} : vector<8x96xf32> to vector<8x64xf32>
    %294 = vector.extract_strided_slice %292 {offsets = [0, 0], sizes = [8, 64], strides = [1, 1]} : vector<8x96xf32> to vector<8x64xf32>
    %295 = arith.addf %293, %294 : vector<8x64xf32>
    %cst_65 = arith.constant 5.000000e-01 : f32
    %296 = vector.broadcast %cst_65 : f32 to vector<8x64xf32>
    %297 = arith.mulf %296, %295 : vector<8x64xf32>
    %298 = math.tanh %297 : vector<8x64xf32>
    %cst_66 = arith.constant 1.000000e+00 : f32
    %299 = vector.broadcast %cst_66 : f32 to vector<8x64xf32>
    %300 = arith.addf %298, %299 : vector<8x64xf32>
    %cst_67 = arith.constant 5.000000e-01 : f32
    %301 = vector.broadcast %cst_67 : f32 to vector<8x64xf32>
    %302 = arith.mulf %301, %300 : vector<8x64xf32>
    %303 = vector.extract_strided_slice %302 {offsets = [0, 0], sizes = [8, 32], strides = [1, 1]} : vector<8x64xf32> to vector<8x32xf32>
    %304 = vector.extract_strided_slice %302 {offsets = [0, 32], sizes = [8, 32], strides = [1, 1]} : vector<8x64xf32> to vector<8x32xf32>
    %305 = vector.extract_strided_slice %259 {offsets = [0, 64], sizes = [8, 32], strides = [1, 1]} : vector<8x96xf32> to vector<8x32xf32>
    %306 = vector.extract_strided_slice %292 {offsets = [0, 64], sizes = [8, 32], strides = [1, 1]} : vector<8x96xf32> to vector<8x32xf32>
    %307 = arith.mulf %303, %306 : vector<8x32xf32>
    %308 = arith.addf %305, %307 : vector<8x32xf32>
    %309 = math.tanh %308 : vector<8x32xf32>
    %cst_68 = arith.constant 1.000000e+00 : f32
    %310 = vector.broadcast %cst_68 : f32 to vector<8x32xf32>
    %311 = arith.subf %310, %304 : vector<8x32xf32>
    %312 = arith.mulf %311, %309 : vector<8x32xf32>
    %313 = arith.mulf %304, %290 : vector<8x32xf32>
    %314 = arith.addf %312, %313 : vector<8x32xf32>
    %cst_69 = arith.constant dense<0.000000e+00> : vector<8x96xf32>
    %315 = tpu.matmul %314, %249, %cst_69 {dimension_numbers = #tpu.dot_dimension_numbers<[1], [0], [0], [1], [0, 0, 1, 1], [], []>} : vector<8x32xf32>, vector<32x96xf32>, vector<8x96xf32> -> vector<8x96xf32>
    %316 = arith.addf %315, %253 : vector<8x96xf32>
    %317 = vector.extract_strided_slice %260 {offsets = [0, 0], sizes = [8, 64], strides = [1, 1]} : vector<8x96xf32> to vector<8x64xf32>
    %318 = vector.extract_strided_slice %316 {offsets = [0, 0], sizes = [8, 64], strides = [1, 1]} : vector<8x96xf32> to vector<8x64xf32>
    %319 = arith.addf %317, %318 : vector<8x64xf32>
    %cst_70 = arith.constant 5.000000e-01 : f32
    %320 = vector.broadcast %cst_70 : f32 to vector<8x64xf32>
    %321 = arith.mulf %320, %319 : vector<8x64xf32>
    %322 = math.tanh %321 : vector<8x64xf32>
    %cst_71 = arith.constant 1.000000e+00 : f32
    %323 = vector.broadcast %cst_71 : f32 to vector<8x64xf32>
    %324 = arith.addf %322, %323 : vector<8x64xf32>
    %cst_72 = arith.constant 5.000000e-01 : f32
    %325 = vector.broadcast %cst_72 : f32 to vector<8x64xf32>
    %326 = arith.mulf %325, %324 : vector<8x64xf32>
    %327 = vector.extract_strided_slice %326 {offsets = [0, 0], sizes = [8, 32], strides = [1, 1]} : vector<8x64xf32> to vector<8x32xf32>
    %328 = vector.extract_strided_slice %326 {offsets = [0, 32], sizes = [8, 32], strides = [1, 1]} : vector<8x64xf32> to vector<8x32xf32>
    %329 = vector.extract_strided_slice %260 {offsets = [0, 64], sizes = [8, 32], strides = [1, 1]} : vector<8x96xf32> to vector<8x32xf32>
    %330 = vector.extract_strided_slice %316 {offsets = [0, 64], sizes = [8, 32], strides = [1, 1]} : vector<8x96xf32> to vector<8x32xf32>
    %331 = arith.mulf %327, %330 : vector<8x32xf32>
    %332 = arith.addf %329, %331 : vector<8x32xf32>
    %333 = math.tanh %332 : vector<8x32xf32>
    %cst_73 = arith.constant 1.000000e+00 : f32
    %334 = vector.broadcast %cst_73 : f32 to vector<8x32xf32>
    %335 = arith.subf %334, %328 : vector<8x32xf32>
    %336 = arith.mulf %335, %333 : vector<8x32xf32>
    %337 = arith.mulf %328, %314 : vector<8x32xf32>
    %338 = arith.addf %336, %337 : vector<8x32xf32>
    %cst_74 = arith.constant dense<0.000000e+00> : vector<8x96xf32>
    %339 = tpu.matmul %338, %249, %cst_74 {dimension_numbers = #tpu.dot_dimension_numbers<[1], [0], [0], [1], [0, 0, 1, 1], [], []>} : vector<8x32xf32>, vector<32x96xf32>, vector<8x96xf32> -> vector<8x96xf32>
    %340 = arith.addf %339, %253 : vector<8x96xf32>
    %341 = vector.extract_strided_slice %261 {offsets = [0, 0], sizes = [8, 64], strides = [1, 1]} : vector<8x96xf32> to vector<8x64xf32>
    %342 = vector.extract_strided_slice %340 {offsets = [0, 0], sizes = [8, 64], strides = [1, 1]} : vector<8x96xf32> to vector<8x64xf32>
    %343 = arith.addf %341, %342 : vector<8x64xf32>
    %cst_75 = arith.constant 5.000000e-01 : f32
    %344 = vector.broadcast %cst_75 : f32 to vector<8x64xf32>
    %345 = arith.mulf %344, %343 : vector<8x64xf32>
    %346 = math.tanh %345 : vector<8x64xf32>
    %cst_76 = arith.constant 1.000000e+00 : f32
    %347 = vector.broadcast %cst_76 : f32 to vector<8x64xf32>
    %348 = arith.addf %346, %347 : vector<8x64xf32>
    %cst_77 = arith.constant 5.000000e-01 : f32
    %349 = vector.broadcast %cst_77 : f32 to vector<8x64xf32>
    %350 = arith.mulf %349, %348 : vector<8x64xf32>
    %351 = vector.extract_strided_slice %350 {offsets = [0, 0], sizes = [8, 32], strides = [1, 1]} : vector<8x64xf32> to vector<8x32xf32>
    %352 = vector.extract_strided_slice %350 {offsets = [0, 32], sizes = [8, 32], strides = [1, 1]} : vector<8x64xf32> to vector<8x32xf32>
    %353 = vector.extract_strided_slice %261 {offsets = [0, 64], sizes = [8, 32], strides = [1, 1]} : vector<8x96xf32> to vector<8x32xf32>
    %354 = vector.extract_strided_slice %340 {offsets = [0, 64], sizes = [8, 32], strides = [1, 1]} : vector<8x96xf32> to vector<8x32xf32>
    %355 = arith.mulf %351, %354 : vector<8x32xf32>
    %356 = arith.addf %353, %355 : vector<8x32xf32>
    %357 = math.tanh %356 : vector<8x32xf32>
    %cst_78 = arith.constant 1.000000e+00 : f32
    %358 = vector.broadcast %cst_78 : f32 to vector<8x32xf32>
    %359 = arith.subf %358, %352 : vector<8x32xf32>
    %360 = arith.mulf %359, %357 : vector<8x32xf32>
    %361 = arith.mulf %352, %338 : vector<8x32xf32>
    %362 = arith.addf %360, %361 : vector<8x32xf32>
    %cst_79 = arith.constant dense<0.000000e+00> : vector<8x96xf32>
    %363 = tpu.matmul %362, %249, %cst_79 {dimension_numbers = #tpu.dot_dimension_numbers<[1], [0], [0], [1], [0, 0, 1, 1], [], []>} : vector<8x32xf32>, vector<32x96xf32>, vector<8x96xf32> -> vector<8x96xf32>
    %364 = arith.addf %363, %253 : vector<8x96xf32>
    %365 = vector.extract_strided_slice %262 {offsets = [0, 0], sizes = [8, 64], strides = [1, 1]} : vector<8x96xf32> to vector<8x64xf32>
    %366 = vector.extract_strided_slice %364 {offsets = [0, 0], sizes = [8, 64], strides = [1, 1]} : vector<8x96xf32> to vector<8x64xf32>
    %367 = arith.addf %365, %366 : vector<8x64xf32>
    %cst_80 = arith.constant 5.000000e-01 : f32
    %368 = vector.broadcast %cst_80 : f32 to vector<8x64xf32>
    %369 = arith.mulf %368, %367 : vector<8x64xf32>
    %370 = math.tanh %369 : vector<8x64xf32>
    %cst_81 = arith.constant 1.000000e+00 : f32
    %371 = vector.broadcast %cst_81 : f32 to vector<8x64xf32>
    %372 = arith.addf %370, %371 : vector<8x64xf32>
    %cst_82 = arith.constant 5.000000e-01 : f32
    %373 = vector.broadcast %cst_82 : f32 to vector<8x64xf32>
    %374 = arith.mulf %373, %372 : vector<8x64xf32>
    %375 = vector.extract_strided_slice %374 {offsets = [0, 0], sizes = [8, 32], strides = [1, 1]} : vector<8x64xf32> to vector<8x32xf32>
    %376 = vector.extract_strided_slice %374 {offsets = [0, 32], sizes = [8, 32], strides = [1, 1]} : vector<8x64xf32> to vector<8x32xf32>
    %377 = vector.extract_strided_slice %262 {offsets = [0, 64], sizes = [8, 32], strides = [1, 1]} : vector<8x96xf32> to vector<8x32xf32>
    %378 = vector.extract_strided_slice %364 {offsets = [0, 64], sizes = [8, 32], strides = [1, 1]} : vector<8x96xf32> to vector<8x32xf32>
    %379 = arith.mulf %375, %378 : vector<8x32xf32>
    %380 = arith.addf %377, %379 : vector<8x32xf32>
    %381 = math.tanh %380 : vector<8x32xf32>
    %cst_83 = arith.constant 1.000000e+00 : f32
    %382 = vector.broadcast %cst_83 : f32 to vector<8x32xf32>
    %383 = arith.subf %382, %376 : vector<8x32xf32>
    %384 = arith.mulf %383, %381 : vector<8x32xf32>
    %385 = arith.mulf %376, %362 : vector<8x32xf32>
    %386 = arith.addf %384, %385 : vector<8x32xf32>
    %cst_84 = arith.constant dense<0.000000e+00> : vector<8x96xf32>
    %387 = tpu.matmul %386, %249, %cst_84 {dimension_numbers = #tpu.dot_dimension_numbers<[1], [0], [0], [1], [0, 0, 1, 1], [], []>} : vector<8x32xf32>, vector<32x96xf32>, vector<8x96xf32> -> vector<8x96xf32>
    %388 = arith.addf %387, %253 : vector<8x96xf32>
    %389 = vector.extract_strided_slice %263 {offsets = [0, 0], sizes = [8, 64], strides = [1, 1]} : vector<8x96xf32> to vector<8x64xf32>
    %390 = vector.extract_strided_slice %388 {offsets = [0, 0], sizes = [8, 64], strides = [1, 1]} : vector<8x96xf32> to vector<8x64xf32>
    %391 = arith.addf %389, %390 : vector<8x64xf32>
    %cst_85 = arith.constant 5.000000e-01 : f32
    %392 = vector.broadcast %cst_85 : f32 to vector<8x64xf32>
    %393 = arith.mulf %392, %391 : vector<8x64xf32>
    %394 = math.tanh %393 : vector<8x64xf32>
    %cst_86 = arith.constant 1.000000e+00 : f32
    %395 = vector.broadcast %cst_86 : f32 to vector<8x64xf32>
    %396 = arith.addf %394, %395 : vector<8x64xf32>
    %cst_87 = arith.constant 5.000000e-01 : f32
    %397 = vector.broadcast %cst_87 : f32 to vector<8x64xf32>
    %398 = arith.mulf %397, %396 : vector<8x64xf32>
    %399 = vector.extract_strided_slice %398 {offsets = [0, 0], sizes = [8, 32], strides = [1, 1]} : vector<8x64xf32> to vector<8x32xf32>
    %400 = vector.extract_strided_slice %398 {offsets = [0, 32], sizes = [8, 32], strides = [1, 1]} : vector<8x64xf32> to vector<8x32xf32>
    %401 = vector.extract_strided_slice %263 {offsets = [0, 64], sizes = [8, 32], strides = [1, 1]} : vector<8x96xf32> to vector<8x32xf32>
    %402 = vector.extract_strided_slice %388 {offsets = [0, 64], sizes = [8, 32], strides = [1, 1]} : vector<8x96xf32> to vector<8x32xf32>
    %403 = arith.mulf %399, %402 : vector<8x32xf32>
    %404 = arith.addf %401, %403 : vector<8x32xf32>
    %405 = math.tanh %404 : vector<8x32xf32>
    %cst_88 = arith.constant 1.000000e+00 : f32
    %406 = vector.broadcast %cst_88 : f32 to vector<8x32xf32>
    %407 = arith.subf %406, %400 : vector<8x32xf32>
    %408 = arith.mulf %407, %405 : vector<8x32xf32>
    %409 = arith.mulf %400, %386 : vector<8x32xf32>
    %410 = arith.addf %408, %409 : vector<8x32xf32>
    %cst_89 = arith.constant dense<0.000000e+00> : vector<8x96xf32>
    %411 = tpu.matmul %410, %249, %cst_89 {dimension_numbers = #tpu.dot_dimension_numbers<[1], [0], [0], [1], [0, 0, 1, 1], [], []>} : vector<8x32xf32>, vector<32x96xf32>, vector<8x96xf32> -> vector<8x96xf32>
    %412 = arith.addf %411, %253 : vector<8x96xf32>
    %413 = vector.extract_strided_slice %264 {offsets = [0, 0], sizes = [8, 64], strides = [1, 1]} : vector<8x96xf32> to vector<8x64xf32>
    %414 = vector.extract_strided_slice %412 {offsets = [0, 0], sizes = [8, 64], strides = [1, 1]} : vector<8x96xf32> to vector<8x64xf32>
    %415 = arith.addf %413, %414 : vector<8x64xf32>
    %cst_90 = arith.constant 5.000000e-01 : f32
    %416 = vector.broadcast %cst_90 : f32 to vector<8x64xf32>
    %417 = arith.mulf %416, %415 : vector<8x64xf32>
    %418 = math.tanh %417 : vector<8x64xf32>
    %cst_91 = arith.constant 1.000000e+00 : f32
    %419 = vector.broadcast %cst_91 : f32 to vector<8x64xf32>
    %420 = arith.addf %418, %419 : vector<8x64xf32>
    %cst_92 = arith.constant 5.000000e-01 : f32
    %421 = vector.broadcast %cst_92 : f32 to vector<8x64xf32>
    %422 = arith.mulf %421, %420 : vector<8x64xf32>
    %423 = vector.extract_strided_slice %422 {offsets = [0, 0], sizes = [8, 32], strides = [1, 1]} : vector<8x64xf32> to vector<8x32xf32>
    %424 = vector.extract_strided_slice %422 {offsets = [0, 32], sizes = [8, 32], strides = [1, 1]} : vector<8x64xf32> to vector<8x32xf32>
    %425 = vector.extract_strided_slice %264 {offsets = [0, 64], sizes = [8, 32], strides = [1, 1]} : vector<8x96xf32> to vector<8x32xf32>
    %426 = vector.extract_strided_slice %412 {offsets = [0, 64], sizes = [8, 32], strides = [1, 1]} : vector<8x96xf32> to vector<8x32xf32>
    %427 = arith.mulf %423, %426 : vector<8x32xf32>
    %428 = arith.addf %425, %427 : vector<8x32xf32>
    %429 = math.tanh %428 : vector<8x32xf32>
    %cst_93 = arith.constant 1.000000e+00 : f32
    %430 = vector.broadcast %cst_93 : f32 to vector<8x32xf32>
    %431 = arith.subf %430, %424 : vector<8x32xf32>
    %432 = arith.mulf %431, %429 : vector<8x32xf32>
    %433 = arith.mulf %424, %410 : vector<8x32xf32>
    %434 = arith.addf %432, %433 : vector<8x32xf32>
    %cst_94 = arith.constant dense<0.000000e+00> : vector<8x96xf32>
    %435 = tpu.matmul %434, %249, %cst_94 {dimension_numbers = #tpu.dot_dimension_numbers<[1], [0], [0], [1], [0, 0, 1, 1], [], []>} : vector<8x32xf32>, vector<32x96xf32>, vector<8x96xf32> -> vector<8x96xf32>
    %436 = arith.addf %435, %253 : vector<8x96xf32>
    %437 = vector.extract_strided_slice %265 {offsets = [0, 0], sizes = [8, 64], strides = [1, 1]} : vector<8x96xf32> to vector<8x64xf32>
    %438 = vector.extract_strided_slice %436 {offsets = [0, 0], sizes = [8, 64], strides = [1, 1]} : vector<8x96xf32> to vector<8x64xf32>
    %439 = arith.addf %437, %438 : vector<8x64xf32>
    %cst_95 = arith.constant 5.000000e-01 : f32
    %440 = vector.broadcast %cst_95 : f32 to vector<8x64xf32>
    %441 = arith.mulf %440, %439 : vector<8x64xf32>
    %442 = math.tanh %441 : vector<8x64xf32>
    %cst_96 = arith.constant 1.000000e+00 : f32
    %443 = vector.broadcast %cst_96 : f32 to vector<8x64xf32>
    %444 = arith.addf %442, %443 : vector<8x64xf32>
    %cst_97 = arith.constant 5.000000e-01 : f32
    %445 = vector.broadcast %cst_97 : f32 to vector<8x64xf32>
    %446 = arith.mulf %445, %444 : vector<8x64xf32>
    %447 = vector.extract_strided_slice %446 {offsets = [0, 0], sizes = [8, 32], strides = [1, 1]} : vector<8x64xf32> to vector<8x32xf32>
    %448 = vector.extract_strided_slice %446 {offsets = [0, 32], sizes = [8, 32], strides = [1, 1]} : vector<8x64xf32> to vector<8x32xf32>
    %449 = vector.extract_strided_slice %265 {offsets = [0, 64], sizes = [8, 32], strides = [1, 1]} : vector<8x96xf32> to vector<8x32xf32>
    %450 = vector.extract_strided_slice %436 {offsets = [0, 64], sizes = [8, 32], strides = [1, 1]} : vector<8x96xf32> to vector<8x32xf32>
    %451 = arith.mulf %447, %450 : vector<8x32xf32>
    %452 = arith.addf %449, %451 : vector<8x32xf32>
    %453 = math.tanh %452 : vector<8x32xf32>
    %cst_98 = arith.constant 1.000000e+00 : f32
    %454 = vector.broadcast %cst_98 : f32 to vector<8x32xf32>
    %455 = arith.subf %454, %448 : vector<8x32xf32>
    %456 = arith.mulf %455, %453 : vector<8x32xf32>
    %457 = arith.mulf %448, %434 : vector<8x32xf32>
    %458 = arith.addf %456, %457 : vector<8x32xf32>
    %c0_99 = arith.constant 0 : index
    %c0_100 = arith.constant 0 : index
    %459 = vector.load %arg10[%c0_99, %c0_100] : memref<32x32xf32, #tpu.memory_space<vmem>>, vector<32x32xf32>
    %cst_101 = arith.constant dense<0.000000e+00> : vector<8x32xf32>
    %460 = tpu.matmul %458, %459, %cst_101 {dimension_numbers = #tpu.dot_dimension_numbers<[1], [0], [0], [1], [0, 0, 1, 1], [], []>} : vector<8x32xf32>, vector<32x32xf32>, vector<8x32xf32> -> vector<8x32xf32>
    %c0_102 = arith.constant 0 : index
    %c0_103 = arith.constant 0 : index
    %461 = vector.load %arg11[%c0_102, %c0_103] : memref<1x32xf32, #tpu.memory_space<vmem>>, vector<1x32xf32>
    %462 = vector.broadcast %461 : vector<1x32xf32> to vector<8x32xf32>
    %463 = arith.addf %460, %462 : vector<8x32xf32>
    %cst_104 = arith.constant 0.000000e+00 : f32
    %464 = vector.broadcast %cst_104 : f32 to vector<8x32xf32>
    %465 = arith.maximumf %463, %464 : vector<8x32xf32>
    %c0_105 = arith.constant 0 : index
    %c0_106 = arith.constant 0 : index
    %466 = vector.load %arg12[%c0_105, %c0_106] : memref<32x128xf32, #tpu.memory_space<vmem>>, vector<32x128xf32>
    %cst_107 = arith.constant dense<0.000000e+00> : vector<8x128xf32>
    %467 = tpu.matmul %465, %466, %cst_107 {dimension_numbers = #tpu.dot_dimension_numbers<[1], [0], [0], [1], [0, 0, 1, 1], [], []>} : vector<8x32xf32>, vector<32x128xf32>, vector<8x128xf32> -> vector<8x128xf32>
    %c0_108 = arith.constant 0 : index
    %c0_109 = arith.constant 0 : index
    %468 = vector.load %arg13[%c0_108, %c0_109] : memref<1x128xf32, #tpu.memory_space<vmem>>, vector<1x128xf32>
    %469 = vector.broadcast %468 : vector<1x128xf32> to vector<8x128xf32>
    %470 = arith.addf %467, %469 : vector<8x128xf32>
    %cst_110 = arith.constant 0.000000e+00 : f32
    %471 = vector.broadcast %cst_110 : f32 to vector<8x128xf32>
    %472 = arith.maximumf %470, %471 : vector<8x128xf32>
    %473 = tpu.iota {dimensions = array<i32: 1>} : vector<8x128xi32>
    %c10_i32 = arith.constant 10 : i32
    %474 = vector.broadcast %c10_i32 : i32 to vector<8x128xi32>
    %475 = arith.cmpi slt, %473, %474 : vector<8x128xi32>
    %cst_111 = arith.constant -1.000000e+30 : f32
    %476 = vector.broadcast %cst_111 : f32 to vector<8x128xf32>
    %477 = arith.select %475, %472, %476 : vector<8x128xi1>, vector<8x128xf32>
    %cst_112 = arith.constant dense<0xFF800000> : vector<8xf32>
    %478 = vector.multi_reduction <maximumf>, %477, %cst_112 [1] : vector<8x128xf32> to vector<8xf32>
    %479 = vector.shape_cast %478 : vector<8xf32> to vector<8x1xf32>
    %480 = vector.broadcast %479 : vector<8x1xf32> to vector<8x128xf32>
    %481 = arith.subf %477, %480 : vector<8x128xf32>
    %482 = math.exp %481 : vector<8x128xf32>
    %cst_113 = arith.constant dense<0.000000e+00> : vector<8xf32>
    %483 = vector.multi_reduction <add>, %482, %cst_113 [1] : vector<8x128xf32> to vector<8xf32>
    %484 = vector.shape_cast %483 : vector<8xf32> to vector<8x1xf32>
    %485 = math.log %484 : vector<8x1xf32>
    %486 = vector.broadcast %485 : vector<8x1xf32> to vector<8x128xf32>
    %487 = arith.subf %481, %486 : vector<8x128xf32>
    %c0_114 = arith.constant 0 : index
    %c0_115 = arith.constant 0 : index
    %488 = vector.load %arg14[%c0_114, %c0_115] : memref<8x128xf32, #tpu.memory_space<vmem>>, vector<8x128xf32>
    tpu.vector_store %arg14[%c0_114, %c0_115], %487 {strides = array<i32>} : memref<8x128xf32, #tpu.memory_space<vmem>>, vector<8x128xf32>,
    return
  }
  func.func @transform_0(%arg0: i32) -> (i32, i32) {
    %c0_i32 = arith.constant 0 : i32
    %c0_i32_0 = arith.constant 0 : i32
    return %arg0, %c0_i32 : i32, i32
  }
  func.func @transform_1(%arg0: i32) -> (i32, i32) {
    %c0_i32 = arith.constant 0 : i32
    %c0_i32_0 = arith.constant 0 : i32
    %c0_i32_1 = arith.constant 0 : i32
    return %c0_i32, %c0_i32_0 : i32, i32
  }
  func.func @transform_2(%arg0: i32) -> (i32, i32) {
    %c0_i32 = arith.constant 0 : i32
    %c0_i32_0 = arith.constant 0 : i32
    %c0_i32_1 = arith.constant 0 : i32
    return %c0_i32, %c0_i32_0 : i32, i32
  }
  func.func @transform_3(%arg0: i32) -> (i32, i32) {
    %c0_i32 = arith.constant 0 : i32
    %c0_i32_0 = arith.constant 0 : i32
    %c0_i32_1 = arith.constant 0 : i32
    return %c0_i32, %c0_i32_0 : i32, i32
  }
  func.func @transform_4(%arg0: i32) -> (i32, i32) {
    %c0_i32 = arith.constant 0 : i32
    %c0_i32_0 = arith.constant 0 : i32
    %c0_i32_1 = arith.constant 0 : i32
    return %c0_i32, %c0_i32_0 : i32, i32
  }
  func.func @transform_5(%arg0: i32) -> (i32, i32) {
    %c0_i32 = arith.constant 0 : i32
    %c0_i32_0 = arith.constant 0 : i32
    %c0_i32_1 = arith.constant 0 : i32
    return %c0_i32, %c0_i32_0 : i32, i32
  }
  func.func @transform_6(%arg0: i32) -> (i32, i32) {
    %c0_i32 = arith.constant 0 : i32
    %c0_i32_0 = arith.constant 0 : i32
    %c0_i32_1 = arith.constant 0 : i32
    return %c0_i32, %c0_i32_0 : i32, i32
  }
  func.func @transform_7(%arg0: i32) -> (i32, i32) {
    %c0_i32 = arith.constant 0 : i32
    %c0_i32_0 = arith.constant 0 : i32
    %c0_i32_1 = arith.constant 0 : i32
    return %c0_i32, %c0_i32_0 : i32, i32
  }
  func.func @transform_8(%arg0: i32) -> (i32, i32) {
    %c0_i32 = arith.constant 0 : i32
    %c0_i32_0 = arith.constant 0 : i32
    %c0_i32_1 = arith.constant 0 : i32
    return %c0_i32, %c0_i32_0 : i32, i32
  }
  func.func @transform_9(%arg0: i32) -> (i32, i32) {
    %c0_i32 = arith.constant 0 : i32
    %c0_i32_0 = arith.constant 0 : i32
    %c0_i32_1 = arith.constant 0 : i32
    return %c0_i32, %c0_i32_0 : i32, i32
  }
  func.func @transform_10(%arg0: i32) -> (i32, i32) {
    %c0_i32 = arith.constant 0 : i32
    %c0_i32_0 = arith.constant 0 : i32
    %c0_i32_1 = arith.constant 0 : i32
    return %c0_i32, %c0_i32_0 : i32, i32
  }
  func.func @transform_11(%arg0: i32) -> (i32, i32) {
    %c0_i32 = arith.constant 0 : i32
    %c0_i32_0 = arith.constant 0 : i32
    %c0_i32_1 = arith.constant 0 : i32
    return %c0_i32, %c0_i32_0 : i32, i32
  }
  func.func @transform_12(%arg0: i32) -> (i32, i32) {
    %c0_i32 = arith.constant 0 : i32
    %c0_i32_0 = arith.constant 0 : i32
    %c0_i32_1 = arith.constant 0 : i32
    return %c0_i32, %c0_i32_0 : i32, i32
  }
  func.func @transform_13(%arg0: i32) -> (i32, i32) {
    %c0_i32 = arith.constant 0 : i32
    %c0_i32_0 = arith.constant 0 : i32
    return %arg0, %c0_i32 : i32, i32
  }
}

</mosaic_0001>

<bundles_post_ra>
// kernel: tpu_custom_call.1
= control target key start
LH: loop header
LB: loop body
LE: loop exit
PB: predicated region body
PF: predicated region fallthrough
CT: control target
= control target key end

     0   :  { %s4410_s0 = inlined_call_operand.vmem [shape: f32[16,8], index: 0, kind: input, shape index: {}]   ;;  %s4411_s1 = inlined_call_operand.vmem [shape: f32[1,96], index: 1, kind: input, shape index: {}]   ;;  %s4412_s2 = inlined_call_operand.hbm [shape: f32[32,96], index: 2, kind: input, shape index: {}]   ;;  %s4413_s3 = inlined_call_operand.hbm [shape: f32[1,96], index: 3, kind: input, shape index: {}]   ;;  %s4414_s4 = inlined_call_operand.hbm [shape: f32[1,96], index: 4, kind: input, shape index: {}]   ;;  %s4415_s5 = inlined_call_operand.vmem [shape: f32[32,96], index: 5, kind: input, shape index: {}]   ;;  %s4416_s6 = inlined_call_operand.hbm [shape: f32[32,96], index: 6, kind: input, shape index: {}]   ;;  %s4417_s7 = inlined_call_operand.hbm [shape: f32[1,96], index: 7, kind: input, shape index: {}]   ;;  %s4418_s8 = inlined_call_operand.hbm [shape: f32[1,96], index: 8, kind: input, shape index: {}]   ;;  %s4419_s9 = inlined_call_operand.hbm [shape: f32[32,32], index: 9, kind: input, shape index: {}]   ;;  %s4420_s10 = inlined_call_operand.hbm [shape: f32[1,32], index: 10, kind: input, shape index: {}]   ;;  %s4421_s11 = inlined_call_operand.vmem [shape: f32[32,128], index: 11, kind: input, shape index: {}]   ;;  %s4422_s12 = inlined_call_operand.vmem [shape: f32[1,128], index: 12, kind: input, shape index: {}]   ;;  %s4423_s13 = inlined_call_operand.hbm [shape: f32[16,128], index: 13, kind: output, shape index: {}]  }
   0x1   :  { %4438 = sst [smem:[#allocation29_spill]] %s4412_s2 }
   0x2   :  { %4439 = sst [smem:[#allocation30_spill]] %s4413_s3 }
   0x3   :  { %4440 = sst [smem:[#allocation31_spill]] %s4416_s6 }
   0x4   :  { %4441 = sst [smem:[#allocation32_spill]] %s4423_s13 }
   0x5   :  { %18 = vsyncpa [#allocation3], 0 }
   0x6   :  { %19 = vsyncpa [#allocation6], 0 }
   0x7   :  { %20 = vsyncpa [#allocation9], 0 }
   0x8   :  { %21 = vsyncpa [#allocation12], 0 }
   0x9   :  { %22 = vsyncpa [#allocation15], 0 }
   0xa   :  { %23 = vsyncpa [#allocation4], 0 }
   0xb   :  { %25 = vsyncpa [#allocation4 + $0x1], 0  ;;  %s3773_s25 = smov 0   ;;  %s3775_s26 = smov 0  }
   0xc   :  { %s3777_s27 = smov 0   ;;  %s3779_s28 = smov 0  }
   0xd LB: > { %4442 = sst [smem:[#allocation23_spill]] %s3665_s25  ;;  %s3794_s29 = sadd.s32 4294967295, %s3677_s28   ;;  %s3677_s28 = sphi %s3779_s28, %s4475_s28   ;;  %s3673_s27 = sphi %s3777_s27, %s4477_s27   ;;  %s3669_s26 = sphi %s3775_s26, %s4479_s26   ;;  %s3665_s25 = sphi %s3773_s25, %s4478_s25  }
   0xe   : > { %4443 = sst [smem:[#allocation24_spill]] %s3673_s27  ;;  %s2667_s30 = sadd.s32 4294967294, %s3677_s28  }
   0xf   : > { %4444 = sst [smem:[#allocation25_spill]] %s3677_s28  ;;  %s3798_s14 = sadd.s32 1, %s3677_s28  }
  0x10   : > { %4445 = sst [smem:[#allocation26_spill]] %s3798_s14  ;;  %s316_s15 = sadd.s32 1, %s3673_s27 }
  0x11   : > { %s313_s16 = ssub.s32 %s3677_s28, %s3798_s14  ;;  %p326_p0 = scmp.ne.s32.totalorder %s3673_s27, %s3669_s26 }
  0x12   : > { %p314_p1 = scmp.eq.s32.totalorder %s313_s16, 0  ;;  %p327_p2 = scmp.eq.s32.totalorder %s3794_s29, 1 }
  0x13   : > { %p332_p3 = scmp.ne.s32.totalorder %s3669_s26, %s3665_s25  ;;  %p333_p4 = scmp.eq.s32.totalorder %s2667_s30, 1 }
  0x14   : > { %s3809_s17 = scalar_select %p314_p1, %s3673_s27, %s316_s15  }
  0x15   : > { %p3811_p5 = por %p327_p2, %p326_p0  ;;  %p3815_p6 = por %p333_p4, %p332_p3 }
  0x16   : > { %4446 = sst [smem:[#allocation27_spill]] %s3809_s17  ;;  %p2668_p7 = scmp.ge.s32.totalorder %s3677_s28, 1 }
  0x17   : > { %s4447_s18 = scalar_select %p3811_p5, 1, 0 }
  0x18   : > { %s4448_s19 = scalar_select %p3815_p6, 1, 0 }
  0x19   : > { %p340_p8 = scmp.lt.s32.totalorder %s3677_s28, 3  ;;  %p4429_p9 = scmp.eq.s32.totalorder %s3794_s29, 0 }
  0x1a   : > { %4449 = sst [smem:[#allocation28_spill]] %s4448_s19  ;;  %s3679_s21 = smov [#allocation5]  }
  0x1b   : > { %p3822_p10 = pnand %p2668_p7, %p340_p8  ;;  %s369_s22 = sshll.u32 %s3679_s21, 4  ;;  %s370_s22 = int_to_ptr.vmem [resolvable:$true] %s369_s22 }
  0x1c   : > { %s3680_s24 = smov [#allocation8]   ;;  %s3681_s15 = smov [#allocation11]  }
  0x1d   : > { %s4450_s20 = scalar_select %p3822_p10, 1, 0 }
  0x1e   : > { %p3194_p11 = pneg %p3822_p10  ;;  %s393_s30 = sshll.u32 %s3680_s24, 4  ;;  %s3834_s30 = int_to_ptr.vmem [resolvable:$true] %s393_s30 }
  0x1f   : > { %s3836_s16 = sshll.u32 %s3681_s15, 4  ;;  %s4452_s3 = sld [smem:[#allocation30_spill]]  ;;  %s419_s16 = int_to_ptr.vmem [resolvable:$true] %s3836_s16 }
  0x20   : > { %p3830_p12 = pnand %p4429_p9, %p3194_p11 }
  0x22   : > { %p3846_p0 = pneg %p3830_p12 }
  0x25   : > { %s3371_s21 = scalar_lea.hbm %s4452_s3, 16 }
  0x26   : > { %p3372_p13 = scmp.ne.s32.totalorder %s4452_s3, %s3371_s21  ;;  %p3378_p3 = scmp.lt.u32.totalorder %s3371_s21, %s4452_s3 }
  0x28   : > { %p3374_p1 = pnand %p3846_p0, %p3372_p13 }
  0x2a   : > { %p3375_p2 = pneg %p3374_p1 }
  0x2c   : > { %p3380_p4 = pnand %p3378_p3, %p3375_p2 }
  0x2e   : > { %3383 = shalt.err (!%p3380_p4)
}
  0x2f   : > { %s3384_s27 = scalar_lea.vmem %s370_s22, 16  ;;  %s3391_s14 = scalar_lea.vmem %s370_s22, 32 }
  0x30   : > { %p3385_p7 = scmp.ne.s32.totalorder %s370_s22, %s3384_s27  ;;  %p3392_p9 = scmp.lt.s32.totalorder %s370_s22, %s370_s22 }
  0x31   : > { %p3393_p6 = scmp.lt.s32.totalorder %s3391_s14, %s3384_s27 }
  0x32   : > { %p3387_p8 = pnand %p3385_p7, %p3846_p0 }
  0x33   : > { %p3394_p5 = por %p3393_p6, %p3392_p9 }
  0x34   : > { %p3388_p11 = pneg %p3387_p8 }
  0x36   : > { %p3395_p10 = pnand %p3394_p5, %p3388_p11 }
  0x38   : > { %3398 = shalt.err (!%p3395_p10)
}
  0x39   : > { %3200 = dma.hbm_to_vmem [thread:$0]  (!%p3830_p12), %s4452_s3, 16, %s370_s22, [#allocation6]  }
  0x3a   : > { %s4454_s6 = sld [smem:[#allocation31_spill]] }
  0x40   : > { %s3399_s15 = scalar_lea.hbm %s4454_s6, 512 }
  0x41   : > { %p3400_p13 = scmp.ne.s32.totalorder %s4454_s6, %s3399_s15  ;;  %p3406_p5 = scmp.lt.u32.totalorder %s3399_s15, %s4454_s6 }
  0x43   : > { %p3402_p1 = pnand %p3400_p13, %p3846_p0 }
  0x45   : > { %p3403_p6 = pneg %p3402_p1 }
  0x47   : > { %p3408_p9 = pnand %p3406_p5, %p3403_p6 }
  0x49   : > { %3411 = shalt.err (!%p3408_p9)
}
  0x4a   : > { %s3412_s22 = scalar_lea.vmem %s3834_s30, 512  ;;  %p3420_p4 = scmp.lt.s32.totalorder %s3834_s30, %s3834_s30 }
  0x4b   : > { %p3413_p10 = scmp.ne.s32.totalorder %s3834_s30, %s3412_s22  ;;  %p3421_p7 = scmp.lt.s32.totalorder %s3412_s22, %s3412_s22 }
  0x4d   : > { %p3415_p2 = pnand %p3413_p10, %p3846_p0  ;;  %p3422_p8 = por %p3421_p7, %p3420_p4 }
  0x4f   : > { %p3416_p3 = pneg %p3415_p2 }
  0x51   : > { %p3423_p11 = pnand %p3422_p8, %p3416_p3 }
  0x53   : > { %3426 = shalt.err (!%p3423_p11)
}
  0x54   : > { %s4434_s13 = smov 128   ;;  %s4436_s28 = smov 8  }
  0x55   : > { %3206 = dma.hbm_to_vmem [thread:$0]  (!%p3830_p12), %s4454_s6, 512, %s3834_s30, [#allocation9], %s4434_s13, %s4434_s13, %s4436_s28  }
  0x56   : > { %s3427_s15 = scalar_lea.hbm %s4418_s8, 16 }
  0x57   : > { %p3428_p13 = scmp.ne.s32.totalorder %s4418_s8, %s3427_s15  ;;  %p3434_p5 = scmp.lt.u32.totalorder %s3427_s15, %s4418_s8 }
  0x59   : > { %p3430_p1 = pnand %p3428_p13, %p3846_p0 }
  0x5b   : > { %p3431_p6 = pneg %p3430_p1 }
  0x5d   : > { %p3436_p9 = pnand %p3434_p5, %p3431_p6 }
  0x5f   : > { %3439 = shalt.err (!%p3436_p9)
}
  0x60   : > { %s3440_s17 = scalar_lea.vmem %s419_s16, 16  ;;  %s3447_s30 = scalar_lea.vmem %s419_s16, 32 }
  0x61   : > { %p3441_p10 = scmp.ne.s32.totalorder %s419_s16, %s3440_s17  ;;  %p3448_p4 = scmp.lt.s32.totalorder %s419_s16, %s419_s16 }
  0x62   : > { %p3449_p7 = scmp.lt.s32.totalorder %s3447_s30, %s3440_s17 }
  0x63   : > { %p3443_p2 = pnand %p3441_p10, %p3846_p0 }
  0x64   : > { %p3450_p8 = por %p3449_p7, %p3448_p4 }
  0x65   : > { %p3444_p3 = pneg %p3443_p2 }
  0x67   : > { %p3451_p11 = pnand %p3450_p8, %p3444_p3 }
  0x69   : > { %3454 = shalt.err (!%p3451_p11)
}
  0x6a   : > { %3212 = dma.hbm_to_vmem [thread:$0]  (!%p3830_p12), %s4418_s8, 16, %s419_s16, [#allocation12]  }
  0x6b   : > { %s3684_s3 = smov [#allocation2]   ;;  %s3685_s15 = smov [#allocation7]  }
  0x6c   : > { %s355_s24 = sshll.u32 %s3684_s3, 4  ;;  %s380_s27 = sshll.u32 %s3685_s15, 4  ;;  %s356_s24 = int_to_ptr.vmem [resolvable:$true] %s355_s24  ;;  %s381_s27 = int_to_ptr.vmem [resolvable:$true] %s380_s27 }
  0x6d   : > { %s4455_s2 = sld [smem:[#allocation29_spill]] }
  0x73   : > { %s3455_s13 = scalar_lea.hbm %s4455_s2, 512 }
  0x74   : > { %p3456_p13 = scmp.ne.s32.totalorder %s4455_s2, %s3455_s13  ;;  %p3462_p5 = scmp.lt.u32.totalorder %s3455_s13, %s4455_s2 }
  0x76   : > { %p3458_p1 = pnand %p3456_p13, %p3846_p0 }
  0x78   : > { %p3459_p6 = pneg %p3458_p1 }
  0x7a   : > { %p3464_p9 = pnand %p3462_p5, %p3459_p6 }
  0x7c   : > { %3467 = shalt.err (!%p3464_p9)
}
  0x7d   : > { %s3468_s16 = scalar_lea.vmem %s356_s24, 512  ;;  %p3476_p4 = scmp.lt.s32.totalorder %s356_s24, %s356_s24 }
  0x7e   : > { %p3469_p10 = scmp.ne.s32.totalorder %s356_s24, %s3468_s16  ;;  %p3477_p7 = scmp.lt.s32.totalorder %s3468_s16, %s3468_s16 }
  0x80   : > { %p3471_p2 = pnand %p3469_p10, %p3846_p0  ;;  %p3478_p8 = por %p3477_p7, %p3476_p4 }
  0x82   : > { %p3472_p3 = pneg %p3471_p2 }
  0x84   : > { %p3479_p11 = pnand %p3478_p8, %p3472_p3 }
  0x86   : > { %3482 = shalt.err (!%p3479_p11)
}
  0x87   : > { %s4456_s21 = smov 8   ;;  %s4457_s3 = smov 128  }
  0x88   : > { %3197 = dma.hbm_to_vmem [thread:$0]  (!%p3830_p12), %s4455_s2, 512, %s356_s24, [#allocation3], %s4457_s3, %s4457_s3, %s4456_s21  }
  0x89   : > { %s3483_s22 = scalar_lea.hbm %s4414_s4, 16 }
  0x8a   : > { %p3484_p13 = scmp.ne.s32.totalorder %s4414_s4, %s3483_s22  ;;  %p3490_p5 = scmp.lt.u32.totalorder %s3483_s22, %s4414_s4 }
  0x8c   : > { %p3486_p1 = pnand %p3484_p13, %p3846_p0 }
  0x8e   : > { %p3487_p6 = pneg %p3486_p1 }
  0x90   : > { %p3492_p9 = pnand %p3490_p5, %p3487_p6 }
  0x92   : > { %3495 = shalt.err (!%p3492_p9)
}
  0x93   : > { %s3496_s28 = scalar_lea.vmem %s381_s27, 16  ;;  %s3503_s24 = scalar_lea.vmem %s381_s27, 32 }
  0x94   : > { %p3497_p10 = scmp.ne.s32.totalorder %s381_s27, %s3496_s28  ;;  %p3504_p4 = scmp.lt.s32.totalorder %s381_s27, %s381_s27 }
  0x95   : > { %p3505_p7 = scmp.lt.s32.totalorder %s3503_s24, %s3496_s28 }
  0x96   : > { %p3499_p2 = pnand %p3497_p10, %p3846_p0 }
  0x97   : > { %p3506_p8 = por %p3505_p7, %p3504_p4 }
  0x98   : > { %p3500_p3 = pneg %p3499_p2 }
  0x9a   : > { %p3507_p11 = pnand %p3506_p8, %p3500_p3 }
  0x9c   : > { %3510 = shalt.err (!%p3507_p11)
}
  0x9d   : > { %3203 = dma.hbm_to_vmem [thread:$0]  (!%p3830_p12), %s4414_s4, 16, %s381_s27, [#allocation6]  }
  0x9e   : > { %s3686_s14 = smov [#allocation10]   ;;  %s3687_s17 = smov [#allocation13]  }
  0x9f   : > { %s407_s22 = sshll.u32 %s3686_s14, 4  ;;  %s428_s30 = sshll.u32 %s3687_s17, 4  ;;  %s408_s22 = int_to_ptr.vmem [resolvable:$true] %s407_s22  ;;  %s429_s30 = int_to_ptr.vmem [resolvable:$true] %s428_s30 }
  0xa0   : > { %s3511_s2 = scalar_lea.hbm %s4417_s7, 16 }
  0xa1   : > { %p3512_p13 = scmp.ne.s32.totalorder %s4417_s7, %s3511_s2  ;;  %p3518_p5 = scmp.lt.u32.totalorder %s3511_s2, %s4417_s7 }
  0xa3   : > { %p3514_p1 = pnand %p3512_p13, %p3846_p0 }
  0xa5   : > { %p3515_p6 = pneg %p3514_p1 }
  0xa7   : > { %p3520_p9 = pnand %p3518_p5, %p3515_p6 }
  0xa9   : > { %3523 = shalt.err (!%p3520_p9)
}
  0xaa   : > { %s3524_s27 = scalar_lea.vmem %s408_s22, 16  ;;  %s3531_s15 = scalar_lea.vmem %s408_s22, 32 }
  0xab   : > { %p3525_p10 = scmp.ne.s32.totalorder %s408_s22, %s3524_s27  ;;  %p3532_p4 = scmp.lt.s32.totalorder %s408_s22, %s408_s22 }
  0xac   : > { %p3533_p7 = scmp.lt.s32.totalorder %s3531_s15, %s3524_s27 }
  0xad   : > { %p3527_p2 = pnand %p3525_p10, %p3846_p0 }
  0xae   : > { %p3534_p8 = por %p3533_p7, %p3532_p4 }
  0xaf   : > { %p3528_p3 = pneg %p3527_p2 }
  0xb1   : > { %p3535_p11 = pnand %p3534_p8, %p3528_p3 }
  0xb3   : > { %3538 = shalt.err (!%p3535_p11)
}
  0xb4   : > { %3209 = dma.hbm_to_vmem [thread:$0]  (!%p3830_p12), %s4417_s7, 16, %s408_s22, [#allocation9]  }
  0xb5   : > { %s3539_s19 = scalar_lea.hbm %s4419_s9, 512 }
  0xb6   : > { %p3540_p13 = scmp.ne.s32.totalorder %s4419_s9, %s3539_s19  ;;  %p3546_p5 = scmp.lt.u32.totalorder %s3539_s19, %s4419_s9 }
  0xb8   : > { %p3542_p1 = pnand %p3540_p13, %p3846_p0 }
  0xba   : > { %p3543_p6 = pneg %p3542_p1 }
  0xbc   : > { %p3548_p9 = pnand %p3546_p5, %p3543_p6 }
  0xbe   : > { %3551 = shalt.err (!%p3548_p9)
}
  0xbf   : > { %s3552_s27 = scalar_lea.vmem %s429_s30, 512  ;;  %p3560_p4 = scmp.lt.s32.totalorder %s429_s30, %s429_s30 }
  0xc0   : > { %p3553_p10 = scmp.ne.s32.totalorder %s429_s30, %s3552_s27  ;;  %p3561_p7 = scmp.lt.s32.totalorder %s3552_s27, %s3552_s27 }
  0xc2   : > { %p3555_p2 = pnand %p3553_p10, %p3846_p0  ;;  %p3562_p8 = por %p3561_p7, %p3560_p4 }
  0xc4   : > { %p3556_p3 = pneg %p3555_p2 }
  0xc6   : > { %p3563_p11 = pnand %p3562_p8, %p3556_p3 }
  0xc8   : > { %3566 = shalt.err (!%p3563_p11)
}
  0xc9   : > { %3215 = dma.hbm_to_vmem [thread:$0]  (!%p3830_p12), %s4419_s9, 512, %s429_s30, [#allocation12], %s4457_s3, %s4457_s3, %s4456_s21  }
  0xca   : > { %s3688_s14 = smov [#allocation14]   ;;  %s3567_s19 = scalar_lea.hbm %s4420_s10, 16 }
  0xcb   : > { %s442_s17 = sshll.u32 %s3688_s14, 4  ;;  %p3568_p13 = scmp.ne.s32.totalorder %s4420_s10, %s3567_s19  ;;  %s443_s17 = int_to_ptr.vmem [resolvable:$true] %s442_s17 }
  0xcc   : > { %p3574_p5 = scmp.lt.u32.totalorder %s3567_s19, %s4420_s10 }
  0xcd   : > { %p3570_p1 = pnand %p3568_p13, %p3846_p0 }
  0xcf   : > { %p3571_p6 = pneg %p3570_p1 }
  0xd1   : > { %p3576_p9 = pnand %p3574_p5, %p3571_p6 }
  0xd3   : > { %3579 = shalt.err (!%p3576_p9)
}
  0xd4   : > { %s3580_s21 = scalar_lea.vmem %s443_s17, 16  ;;  %s3587_s3 = scalar_lea.vmem %s443_s17, 32 }
  0xd5   : > { %p3581_p10 = scmp.ne.s32.totalorder %s443_s17, %s3580_s21  ;;  %p3588_p4 = scmp.lt.s32.totalorder %s443_s17, %s443_s17 }
  0xd6   : > { %p3589_p7 = scmp.lt.s32.totalorder %s3587_s3, %s3580_s21 }
  0xd7   : > { %p3583_p2 = pnand %p3581_p10, %p3846_p0 }
  0xd8   : > { %p3590_p8 = por %p3589_p7, %p3588_p4 }
  0xd9   : > { %p3584_p3 = pneg %p3583_p2 }
  0xdb   : > { %p3591_p11 = pnand %p3590_p8, %p3584_p3 }
  0xdd   : > { %3594 = shalt.err (!%p3591_p11)
}
  0xde   : > { %3218 = dma.hbm_to_vmem [thread:$0]  (!%p3830_p12), %s4420_s10, 16, %s443_s17, [#allocation15]  }
  0xdf   : > { %p4458_p13 = scmp.ne.s32.totalorder %s4450_s20, 0 }
  0xe0   : > { %p4459_p1 = scmp.eq.s32.totalorder (!%p4458_p13), %s3794_s29, 0 }
  0xe1   : > { %468 = sbr.rel (%p4458_p13) target bundleno = 11421 (0x2c9d), region = 72 }
  0xe8   : > { %3640 = dma.done.wait (%p4459_p1), [#allocation3], 512   ;;  %p4460_p0 = pmov %p4459_p1 }
  0xea   : > { %3642 = vsyncadd (%p4460_p0), [#allocation3], 4294966784  ;;  %p4461_p6 = pmov %p4460_p0 }
  0xeb   : > { %p4462_p5 = pmov %p4460_p0 }
  0xec   : > { %3644 = dma.done.wait (%p4461_p6), [#allocation6], 32  }
  0xed   : > { %3646 = vsyncadd (%p4462_p5), [#allocation6], 4294967264  ;;  %p4463_p9 = pmov %p4460_p0 }
  0xee   : > { %p4464_p12 = pmov %p4460_p0 }
  0xef   : > { %3648 = dma.done.wait (%p4463_p9), [#allocation9], 528  }
  0xf0   : > { %3650 = vsyncadd (%p4464_p12), [#allocation9], 4294966768  ;;  %p4465_p10 = pmov %p4460_p0 }
  0xf1   : > { %p4466_p2 = pmov %p4460_p0 }
  0xf2   : > { %3652 = dma.done.wait (%p4465_p10), [#allocation12], 528  }
  0xf3   : > { %3654 = vsyncadd (%p4466_p2), [#allocation12], 4294966768  ;;  %p4467_p3 = pmov %p4460_p0 }
  0xf4   : > { %p4468_p4 = pmov %p4460_p0 }
  0xf5   : > { %3656 = dma.done.wait (%p4467_p3), [#allocation15], 16  }
  0xf6   : > { %3658 = vsyncadd (%p4468_p4), [#allocation15], 4294967280  ;;  %v3689_v0 = vmov 0.0|0.0   ;;  %vm3690_vm0 = vmmov 0   ;;  %v3691_v1 = vmov 0.0   ;;  %p539_p7 = scmp.lt.s32.totalorder %s3794_s29, 1 }
  0xf7   : > { %3044 = vmatprep.subr.bf16.mxu0 %v3689_v0  ;;  %2834 = vmatprep.mubr.msk.f32.mxu0 %vm3690_vm0, %v3691_v1  ;;  %v3692_v2 = vmov 0   ;;  %v545_v3 = vld [vmem:[#allocation2] sm:$0xff]  ;;  %v546_v4 = vld [vmem:[#allocation2 + $0x8] sm:$0xff]  ;;  %v547_v5 = vld [vmem:[#allocation2 + $0x10] sm:$0xff]  ;;  %s3693_s14 = smov 64   ;;  %s3694_s6 = smov 96  }
  0xf8   : > { %3295 = vset.pattern.permute.xlu0 %v3692_v2  ;;  %3050 = vmatprep.subr.bf16.mxu1 %v3689_v0  ;;  %s540_s25 = scalar_select %p539_p7, %s3794_s29, 1  ;;  %v4036_v6 = vpack.c.bf16 %v546_v4, %v545_v3  ;;  %v548_v7 = vld [vmem:[#allocation2 + $0x18] sm:$0xff]  ;;  %v4058_v10 = vld [vmem:[#allocation7] ss:$0 sm:$0xff]  ;;  %v4065_v14 = vld [vmem:[%s4411_s1] ss:$0 sm:$0xff] }
  0xf9   : > { %2845 = vmatprep.mubr.msk.f32.mxu1 %vm3690_vm0, %v3691_v1  ;;  %v4042_v9 = vpack.c.bf16 %v548_v7, %v547_v5  ;;  %v4068_v17 = vld [vmem:[#allocation5] ss:$0 sm:$0xff]  ;;  %v3695_v29 = vmov 1   ;;  %vm618_vm1 = vcmask 261120   ;;  %v3696_v52 = vmov 2   ;;  %s536_s19 = sand.u32 1, %s3669_s26  }
  0xfa   : > { %s2688_s20 = sshll.u32 %s540_s25, 3  ;;  %3046 = vmatpush3.bf16.msra.mxu0 %v4036_v6  ;;  %3052 = vmatpush3.bf16.msra.mxu1 %v4036_v6  ;;  %s2687_s16 = sshll.u32 %s536_s19, 3 }
  0xfb   : > { %s542_s15 = scalar_lea.vmem %s4410_s0, %s2688_s20  ;;  %3047 = vmatprep.subr.bf16.mxu0 %v3689_v0  ;;  %3053 = vmatprep.subr.bf16.mxu1 %v3689_v0  ;;  %s2721_s28 = sshll.u32 %s3794_s29, 7 }
  0xfc   : > { %v4038_v8 = vld [vmem:[%s542_s15] sm:$0xff]  ;;  %3296 = vset.pattern.permute.xlu1 %v3695_v29  ;;  %s538_s24 = scalar_lea.vmem [#allocation16], %s2687_s16  ;;  %s4469_s30 = sld [smem:[#allocation32_spill]] }
  0xfd   : > { %559 = vperm.xlu0 %3295, %v4038_v8   ;;  %s2529_s13 = sshll.u32 %s538_s24, 4  ;;  %s2516_s25 = scalar_lea.sflag [#allocation4], %s536_s19  ;;  %s4370_s13 = int_to_ptr.vmem [resolvable:$true] %s2529_s13 }
  0xfe   : > { %3049 = vmatpush3.bf16.msra.mxu0 %v4042_v9  ;;  %3055 = vmatpush3.bf16.msra.mxu1 %v4042_v9  ;;  %s3595_s20 = scalar_lea.vmem %s4370_s13, 128  ;;  %p4470_p11 = scmp.ne.s32.totalorder %s4447_s18, 0 }
  0xff   : > { %3056 = vmatprep.subr.bf16.mxu0 %v3689_v0  ;;  %3062 = vmatprep.subr.bf16.mxu1 %v3689_v0  ;;  %p3596_p8 = scmp.ne.s32.totalorder %s4370_s13, %s3595_s20  ;;  %s3702_s29 = smov [#allocation16]  }
 0x100   : > { %s3599_s23 = sshll.u32 %s3702_s29, 4  ;;  %s3600_s23 = int_to_ptr.vmem [resolvable:$false] %s3599_s23 }
 0x101   : > { %2835 = vmatmul.mubr.f32.vlgmr.msra.gmra.mrb[0].mxu0 %v3691_v1  ;;  %3297 = vset.pattern.permute.xlu0 %v3696_v52  ;;  %p3597_p13 = pnand %p3596_p8, %p4470_p11  ;;  %s3601_s22 = scalar_lea.vmem %s3600_s23, 256 }
 0x102   : > { %3058 = vmatpush3.bf16.msra.mxu0 %v4036_v6  ;;  %2856 = vmatprep.mubr.msk.f32.mxu0 %vm3690_vm0, %v3691_v1  ;;  %s4368_s27 = scalar_lea.hbm %s4469_s30, %s2721_s28  ;;  %p3602_p0 = scmp.lt.s32.totalorder %s4370_s13, %s3600_s23 }
 0x103   : > { %3059 = vmatprep.subr.bf16.mxu0 %v3689_v0  ;;  %p3598_p1 = pneg %p3597_p13  ;;  %p3603_p6 = scmp.lt.s32.totalorder %s3601_s22, %s3595_s20 }
 0x105   : > { %p3604_p5 = por %p3603_p6, %p3602_p0 }
 0x106   : > { %3061 = vmatpush3.bf16.msra.mxu0 %v4042_v9 }
 0x107   : > { %3068 = vmatprep.subr.bf16.mxu0 %v3689_v0  ;;  %p3605_p9 = pnand %p3604_p5, %p3598_p1 }
 0x17c   : > { %v560_v15 = vpop.permute.xlu0 %559 }
 0x17d   : > { %v568_v16 = vmul.f32 %v4065_v14, %v560_v15 }
 0x17f   : > { %v575_v18 = vadd.f32 %v4068_v17, %v568_v16 }
 0x1d4   : > { %v688_v11 = vpop.f32.mrb[0].mxu0 }
 0x1d5   : > { %v689_v12 = vadd.f32 %v4058_v10, %v688_v11  ;;  %v2836_v13 = vpop.f32.mrb[1].mxu0 }
 0x1d7   : > { %698 = vrot.lane.b32.xlu0 %v689_v12, %s3693_s14  ;;  %v692_v19 = vadd.f32 %v689_v12, %v575_v18 }
 0x1d9   : > { %v693_v20 = vmul.f32 0.5, %v692_v19  ;;  %v3697_v19 = vmov 3  }
 0x1db   : > { %3303 = vtanh.f32 %v693_v20 }
 0x1e5   : > { %v3304_v21 = vpop.eup %3303 }
 0x1e6   : > { %v695_v22 = vadd.f32 1.0, %v3304_v21 }
 0x1e8   : > { %v696_v23 = vmul.f32 0.5, %v695_v22 }
 0x1ea   : > { %v708_v30 = vsub.f32 1.0, %v696_v23  ;;  %v714_v32 = vmul.f32 0.0, %v696_v23 }
 0x249   : > { %v699_v24 = vpop.permute.xlu0 %698 }
 0x24a   : > { %v701_v25 = vmul.f32 %v699_v24, %v696_v23 }
 0x24c   : > { %703 = vrot.lane.b32.xlu1 %v701_v25, %s3693_s14 }
 0x2be   : > { %v704_v26 = vpop.permute.xlu1 %703 }
 0x2bf   : > { %v706_v27 = vadd.f32 %v704_v26, %v575_v18 }
 0x2c1   : > { %3305 = vtanh.f32 %v706_v27 }
 0x2cb   : > { %v3306_v28 = vpop.eup %3305 }
 0x2cc   : > { %710 = vrot.lane.b32.xlu1 %v3306_v28, %s3694_s6 }
 0x2d0   : > { %577 = vperm.xlu1 %3296, %v4038_v8  }
 0x33e   : > { %v711_v31 = vpop.permute.xlu1 %710 }
 0x33f   : > { %v713_v33 = vmul.f32 %v711_v31, %v708_v30 }
 0x341   : > { %v715_v34 = vadd.f32 %v714_v32, %v713_v33 }
 0x343   : > { %717 = vrot.lane.b32.xlu0 %v715_v34, %s3694_s6 }
 0x34f   : > { %v578_v39 = vpop.permute.xlu1 %577 }
 0x350   : > { %v580_v40 = vmul.f32 %v4065_v14, %v578_v39 }
 0x352   : > { %v581_v41 = vadd.f32 %v4068_v17, %v580_v40 }
 0x3b5   : > { %v4075_v35 = vpop.permute.xlu0 %717 }
 0x3b6   : > { %2846 = vmatmul.mubr.msk.f32.vlgmr.msra.gmra.mrb[0].mxu1 %vm618_vm1, %v4075_v35 }
 0x3b7   : > { %3064 = vmatpush3.bf16.msra.mxu1 %v4036_v6  ;;  %2867 = vmatprep.mubr.msk.f32.mxu1 %vm3690_vm0, %v3691_v1 }
 0x3b8   : > { %3065 = vmatprep.subr.bf16.mxu1 %v3689_v0 }
 0x3bb   : > { %3067 = vmatpush3.bf16.msra.mxu1 %v4042_v9 }
 0x3bc   : > { %3074 = vmatprep.subr.bf16.mxu1 %v3689_v0 }
 0x489   : > { %v787_v36 = vpop.f32.mrb[0].mxu1 }
 0x48a   : > { %v788_v37 = vadd.f32 %v4058_v10, %v787_v36  ;;  %v2847_v38 = vpop.f32.mrb[1].mxu1 }
 0x48c   : > { %797 = vrot.lane.b32.xlu0 %v788_v37, %s3693_s14  ;;  %v791_v42 = vadd.f32 %v788_v37, %v581_v41 }
 0x48e   : > { %v792_v43 = vmul.f32 0.5, %v791_v42 }
 0x490   : > { %3307 = vtanh.f32 %v792_v43  ;;  %v3698_v43 = vmov 4  }
 0x49a   : > { %v3308_v44 = vpop.eup %3307 }
 0x49b   : > { %v794_v45 = vadd.f32 1.0, %v3308_v44 }
 0x49d   : > { %v795_v46 = vmul.f32 0.5, %v794_v45 }
 0x49f   : > { %v807_v53 = vsub.f32 1.0, %v795_v46  ;;  %v813_v55 = vmul.f32 %v795_v46, %v715_v34 }
 0x4fe   : > { %v798_v47 = vpop.permute.xlu0 %797 }
 0x4ff   : > { %v800_v48 = vmul.f32 %v798_v47, %v795_v46 }
 0x501   : > { %802 = vrot.lane.b32.xlu1 %v800_v48, %s3693_s14 }
 0x573   : > { %v803_v49 = vpop.permute.xlu1 %802 }
 0x574   : > { %v805_v50 = vadd.f32 %v803_v49, %v581_v41 }
 0x576   : > { %3309 = vtanh.f32 %v805_v50 }
 0x580   : > { %v3310_v51 = vpop.eup %3309 }
 0x581   : > { %809 = vrot.lane.b32.xlu0 %v3310_v51, %s3694_s6 }
 0x585   : > { %583 = vperm.xlu0 %3297, %v4038_v8  }
 0x589   : > { %3298 = vset.pattern.permute.xlu0 %v3697_v19 }
 0x5f3   : > { %v810_v54 = vpop.permute.xlu0 %809 }
 0x5f4   : > { %v812_v56 = vmul.f32 %v810_v54, %v807_v53 }
 0x5f6   : > { %v814_v57 = vadd.f32 %v813_v55, %v812_v56 }
 0x5f8   : > { %816 = vrot.lane.b32.xlu1 %v814_v57, %s3694_s6 }
 0x604   : > { %v584_v62 = vpop.permute.xlu0 %583 }
 0x605   : > { %v586_v63 = vmul.f32 %v4065_v14, %v584_v62 }
 0x607   : > { %v587_v2 = vadd.f32 %v4068_v17, %v586_v63 }
 0x66a   : > { %v4093_v58 = vpop.permute.xlu1 %816 }
 0x66b   : > { %2857 = vmatmul.mubr.msk.f32.vlgmr.msra.gmra.mrb[2].mxu0 %vm618_vm1, %v4093_v58 }
 0x66c   : > { %3070 = vmatpush3.bf16.msra.mxu0 %v4036_v6  ;;  %2878 = vmatprep.mubr.msk.f32.mxu0 %vm3690_vm0, %v3691_v1 }
 0x66d   : > { %3071 = vmatprep.subr.bf16.mxu0 %v3689_v0 }
 0x670   : > { %3073 = vmatpush3.bf16.msra.mxu0 %v4042_v9 }
 0x671   : > { %3080 = vmatprep.subr.bf16.mxu0 %v3689_v0 }
 0x73e   : > { %v886_v59 = vpop.f32.mrb[2].mxu0 }
 0x73f   : > { %v887_v60 = vadd.f32 %v4058_v10, %v886_v59  ;;  %v2858_v61 = vpop.f32.mrb[3].mxu0 }
 0x741   : > { %896 = vrot.lane.b32.xlu1 %v887_v60, %s3693_s14  ;;  %v890_v3 = vadd.f32 %v887_v60, %v587_v2 }
 0x743   : > { %v891_v4 = vmul.f32 0.5, %v890_v3 }
 0x745   : > { %3311 = vtanh.f32 %v891_v4 }
 0x74f   : > { %v3312_v5 = vpop.eup %3311 }
 0x750   : > { %v893_v7 = vadd.f32 1.0, %v3312_v5  ;;  %v3699_v5 = vmov 5  }
 0x752   : > { %v894_v11 = vmul.f32 0.5, %v893_v7 }
 0x754   : > { %v906_v20 = vsub.f32 1.0, %v894_v11  ;;  %v912_v22 = vmul.f32 %v894_v11, %v814_v57 }
 0x7b3   : > { %v897_v12 = vpop.permute.xlu1 %896 }
 0x7b4   : > { %v899_v13 = vmul.f32 %v897_v12, %v894_v11 }
 0x7b6   : > { %901 = vrot.lane.b32.xlu1 %v899_v13, %s3693_s14 }
 0x828   : > { %v902_v15 = vpop.permute.xlu1 %901 }
 0x829   : > { %v904_v16 = vadd.f32 %v902_v15, %v587_v2 }
 0x82b   : > { %3313 = vtanh.f32 %v904_v16 }
 0x835   : > { %v3314_v18 = vpop.eup %3313 }
 0x836   : > { %908 = vrot.lane.b32.xlu0 %v3314_v18, %s3694_s6 }
 0x83a   : > { %589 = vperm.xlu0 %3298, %v4038_v8  }
 0x83e   : > { %3299 = vset.pattern.permute.xlu0 %v3698_v43  ;;  %v1411_v43 = vld [vmem:[%s4415_s5 + $0x10] sm:$0xff] }
 0x8a8   : > { %v909_v21 = vpop.permute.xlu0 %908 }
 0x8a9   : > { %v911_v23 = vmul.f32 %v909_v21, %v906_v20 }
 0x8ab   : > { %v913_v24 = vadd.f32 %v912_v22, %v911_v23 }
 0x8ad   : > { %915 = vrot.lane.b32.xlu1 %v913_v24, %s3694_s6 }
 0x8b9   : > { %v590_v29 = vpop.permute.xlu0 %589 }
 0x8ba   : > { %v592_v30 = vmul.f32 %v4065_v14, %v590_v29 }
 0x8bc   : > { %v593_v31 = vadd.f32 %v4068_v17, %v592_v30 }
 0x91f   : > { %v4111_v25 = vpop.permute.xlu1 %915 }
 0x920   : > { %2868 = vmatmul.mubr.msk.f32.vlgmr.msra.gmra.mrb[2].mxu1 %vm618_vm1, %v4111_v25 }
 0x921   : > { %3076 = vmatpush3.bf16.msra.mxu1 %v4036_v6  ;;  %2889 = vmatprep.mubr.msk.f32.mxu1 %vm3690_vm0, %v3691_v1 }
 0x922   : > { %3077 = vmatprep.subr.bf16.mxu1 %v3689_v0 }
 0x925   : > { %3079 = vmatpush3.bf16.msra.mxu1 %v4042_v9 }
 0x926   : > { %3086 = vmatprep.subr.bf16.mxu1 %v3689_v0 }
 0x9f3   : > { %v985_v26 = vpop.f32.mrb[2].mxu1 }
 0x9f4   : > { %v986_v27 = vadd.f32 %v4058_v10, %v985_v26  ;;  %v2869_v28 = vpop.f32.mrb[3].mxu1 }
 0x9f6   : > { %995 = vrot.lane.b32.xlu1 %v986_v27, %s3693_s14  ;;  %v989_v32 = vadd.f32 %v986_v27, %v593_v31 }
 0x9f8   : > { %v990_v33 = vmul.f32 0.5, %v989_v32  ;;  %v1409_v32 = vld [vmem:[%s4415_s5] sm:$0xff] }
 0x9fa   : > { %3315 = vtanh.f32 %v990_v33  ;;  %v1410_v33 = vld [vmem:[%s4415_s5 + $0x8] sm:$0xff] }
 0xa04   : > { %v3316_v34 = vpop.eup %3315 }
 0xa05   : > { %v992_v36 = vadd.f32 1.0, %v3316_v34  ;;  %v3092_v34 = vpack.c.bf16 %v1410_v33, %v1409_v32 }
 0xa07   : > { %v993_v37 = vmul.f32 0.5, %v992_v36 }
 0xa09   : > { %v1005_v44 = vsub.f32 1.0, %v993_v37  ;;  %v1011_v46 = vmul.f32 %v993_v37, %v913_v24 }
 0xa68   : > { %v996_v38 = vpop.permute.xlu1 %995 }
 0xa69   : > { %v998_v39 = vmul.f32 %v996_v38, %v993_v37 }
 0xa6b   : > { %1000 = vrot.lane.b32.xlu1 %v998_v39, %s3693_s14 }
 0xadd   : > { %v1001_v40 = vpop.permute.xlu1 %1000 }
 0xade   : > { %v1003_v41 = vadd.f32 %v1001_v40, %v593_v31 }
 0xae0   : > { %3317 = vtanh.f32 %v1003_v41 }
 0xaea   : > { %v3318_v42 = vpop.eup %3317 }
 0xaeb   : > { %1007 = vrot.lane.b32.xlu0 %v3318_v42, %s3694_s6  ;;  %v3700_v42 = vmov 6  }
 0xaef   : > { %595 = vperm.xlu0 %3299, %v4038_v8  }
 0xaf3   : > { %3300 = vset.pattern.permute.xlu0 %v3699_v5  ;;  %v1413_v5 = vld [vmem:[#allocation8] sm:$0xff] }
 0xb5d   : > { %v1008_v45 = vpop.permute.xlu0 %1007 }
 0xb5e   : > { %v1010_v47 = vmul.f32 %v1008_v45, %v1005_v44  ;;  %v1412_v44 = vld [vmem:[%s4415_s5 + $0x18] sm:$0xff] }
 0xb5f   : > { %v3096_v45 = vpack.c.bf16 %v1412_v44, %v1411_v43 }
 0xb60   : > { %v1012_v48 = vadd.f32 %v1011_v46, %v1010_v47 }
 0xb62   : > { %1014 = vrot.lane.b32.xlu1 %v1012_v48, %s3694_s6 }
 0xb6e   : > { %v596_v53 = vpop.permute.xlu0 %595 }
 0xb6f   : > { %v598_v54 = vmul.f32 %v4065_v14, %v596_v53 }
 0xb71   : > { %v599_v55 = vadd.f32 %v4068_v17, %v598_v54 }
 0xbd4   : > { %v4129_v49 = vpop.permute.xlu1 %1014 }
 0xbd5   : > { %2879 = vmatmul.mubr.msk.f32.vlgmr.msra.gmra.mrb[4].mxu0 %vm618_vm1, %v4129_v49 }
 0xbd6   : > { %3082 = vmatpush3.bf16.msra.mxu0 %v4036_v6  ;;  %2900 = vmatprep.mubr.msk.f32.mxu0 %vm3690_vm0, %v3691_v1 }
 0xbd7   : > { %3083 = vmatprep.subr.bf16.mxu0 %v3689_v0 }
 0xbda   : > { %3085 = vmatpush3.bf16.msra.mxu0 %v4042_v9 }
 0xbdb   : > { %3093 = vmatprep.subr.bf16.mxu0 %v3092_v34 }
 0xca8   : > { %v1084_v50 = vpop.f32.mrb[4].mxu0 }
 0xca9   : > { %v1085_v51 = vadd.f32 %v4058_v10, %v1084_v50  ;;  %v2880_v52 = vpop.f32.mrb[5].mxu0 }
 0xcab   : > { %1094 = vrot.lane.b32.xlu1 %v1085_v51, %s3693_s14  ;;  %v1088_v56 = vadd.f32 %v1085_v51, %v599_v55 }
 0xcad   : > { %v1089_v57 = vmul.f32 0.5, %v1088_v56 }
 0xcaf   : > { %3319 = vtanh.f32 %v1089_v57 }
 0xcb9   : > { %v3320_v59 = vpop.eup %3319 }
 0xcba   : > { %v1091_v60 = vadd.f32 1.0, %v3320_v59 }
 0xcbc   : > { %v1092_v61 = vmul.f32 0.5, %v1091_v60 }
 0xcbe   : > { %v1104_v7 = vsub.f32 1.0, %v1092_v61  ;;  %v1110_v12 = vmul.f32 %v1092_v61, %v1012_v48 }
 0xd1d   : > { %v1095_v62 = vpop.permute.xlu1 %1094 }
 0xd1e   : > { %v1097_v63 = vmul.f32 %v1095_v62, %v1092_v61 }
 0xd20   : > { %1099 = vrot.lane.b32.xlu1 %v1097_v63, %s3693_s14 }
 0xd92   : > { %v1100_v2 = vpop.permute.xlu1 %1099 }
 0xd93   : > { %v1102_v3 = vadd.f32 %v1100_v2, %v599_v55 }
 0xd95   : > { %3321 = vtanh.f32 %v1102_v3 }
 0xd9f   : > { %v3322_v4 = vpop.eup %3321 }
 0xda0   : > { %1106 = vrot.lane.b32.xlu0 %v3322_v4, %s3694_s6 }
 0xda4   : > { %601 = vperm.xlu0 %3300, %v4038_v8  }
 0xda8   : > { %3301 = vset.pattern.permute.xlu0 %v3700_v42 }
 0xe12   : > { %v1107_v11 = vpop.permute.xlu0 %1106 }
 0xe13   : > { %v1109_v13 = vmul.f32 %v1107_v11, %v1104_v7  ;;  %v1414_v7 = vld [vmem:[#allocation8 + $0x8] sm:$0xff] }
 0xe14   : > { %v4201_v11 = vpack.c.bf16 %v1414_v7, %v1413_v5 }
 0xe15   : > { %v1111_v15 = vadd.f32 %v1110_v12, %v1109_v13  ;;  %v1415_v12 = vld [vmem:[#allocation8 + $0x10] sm:$0xff]  ;;  %v1416_v13 = vld [vmem:[#allocation8 + $0x18] sm:$0xff] }
 0xe17   : > { %1113 = vrot.lane.b32.xlu1 %v1111_v15, %s3694_s6 }
 0xe23   : > { %v602_v21 = vpop.permute.xlu0 %601 }
 0xe24   : > { %v604_v22 = vmul.f32 %v4065_v14, %v602_v21 }
 0xe89   : > { %v1114_v16 = vpop.permute.xlu1 %1113 }
 0xe8a   : > { %2890 = vmatmul.mubr.msk.f32.vlgmr.msra.gmra.mrb[4].mxu1 %vm618_vm1, %v1114_v16 }
 0xe8b   : > { %3088 = vmatpush3.bf16.msra.mxu1 %v4036_v6  ;;  %2911 = vmatprep.mubr.msk.f32.mxu1 %vm3690_vm0, %v3691_v1  ;;  %v605_v6 = vadd.f32 %v4068_v17, %v604_v22 }
 0xe8c   : > { %3089 = vmatprep.subr.bf16.mxu1 %v3689_v0 }
 0xe8f   : > { %3091 = vmatpush3.bf16.msra.mxu1 %v4042_v9 }
 0xe90   : > { %3100 = vmatprep.subr.bf16.mxu1 %v3689_v0 }
 0xf5d   : > { %v1183_v18 = vpop.f32.mrb[4].mxu1 }
 0xf5e   : > { %v1184_v19 = vadd.f32 %v4058_v10, %v1183_v18  ;;  %v2891_v20 = vpop.f32.mrb[5].mxu1 }
 0xf60   : > { %1193 = vrot.lane.b32.xlu1 %v1184_v19, %s3693_s14  ;;  %v1187_v23 = vadd.f32 %v1184_v19, %v605_v6 }
 0xf62   : > { %v1188_v24 = vmul.f32 0.5, %v1187_v23 }
 0xf64   : > { %3323 = vtanh.f32 %v1188_v24  ;;  %v4228_v24 = vld [vmem:[#allocation11] ss:$0 sm:$0xff] }
 0xf6e   : > { %v3324_v26 = vpop.eup %3323 }
 0xf6f   : > { %v1190_v27 = vadd.f32 1.0, %v3324_v26 }
 0xf71   : > { %v1191_v28 = vmul.f32 0.5, %v1190_v27 }
 0xf73   : > { %v1203_v37 = vsub.f32 1.0, %v1191_v28  ;;  %v1209_v39 = vmul.f32 %v1191_v28, %v1111_v15  ;;  %v4205_v15 = vpack.c.bf16 %v1416_v13, %v1415_v12 }
 0xfd2   : > { %v1194_v9 = vpop.permute.xlu1 %1193 }
 0xfd3   : > { %v1196_v29 = vmul.f32 %v1194_v9, %v1191_v28  ;;  %v4232_v9 = vld [vmem:[#allocation10] ss:$0 sm:$0xff] }
 0xfd5   : > { %1198 = vrot.lane.b32.xlu1 %v1196_v29, %s3693_s14 }
0x1047   : > { %v1199_v30 = vpop.permute.xlu1 %1198 }
0x1048   : > { %v1201_v31 = vadd.f32 %v1199_v30, %v605_v6 }
0x104a   : > { %3325 = vtanh.f32 %v1201_v31 }
0x1054   : > { %v3326_v36 = vpop.eup %3325 }
0x1055   : > { %1205 = vrot.lane.b32.xlu0 %v3326_v36, %s3694_s6 }
0x1059   : > { %607 = vperm.xlu0 %3301, %v4038_v8  }
0x10c7   : > { %v1206_v38 = vpop.permute.xlu0 %1205 }
0x10c8   : > { %v1208_v40 = vmul.f32 %v1206_v38, %v1203_v37  ;;  %v3701_v38 = vmov 7  }
0x10c9   : > { %3302 = vset.pattern.permute.xlu0 %v3701_v38 }
0x10ca   : > { %v1210_v41 = vadd.f32 %v1209_v39, %v1208_v40 }
0x10cc   : > { %1212 = vrot.lane.b32.xlu1 %v1210_v41, %s3694_s6 }
0x10d8   : > { %v608_v53 = vpop.permute.xlu0 %607 }
0x10d9   : > { %v610_v54 = vmul.f32 %v4065_v14, %v608_v53 }
0x10db   : > { %v611_v55 = vadd.f32 %v4068_v17, %v610_v54 }
0x113e   : > { %v1213_v46 = vpop.permute.xlu1 %1212 }
0x113f   : > { %2901 = vmatmul.mubr.msk.f32.vlgmr.msra.gmra.mrb[6].mxu0 %vm618_vm1, %v1213_v46 }
0x1140   : > { %3095 = vmatpush3.bf16.msra.mxu0 %v3092_v34  ;;  %2922 = vmatprep.mubr.msk.f32.mxu0 %vm618_vm1, %v4075_v35 }
0x1141   : > { %3097 = vmatprep.subr.bf16.mxu0 %v3096_v45 }
0x1144   : > { %3099 = vmatpush3.bf16.msra.mxu0 %v3096_v45 }
0x1145   : > { %3112 = vmatprep.subr.bf16.mxu0 %v3689_v0 }
0x1147   : > { %2923 = vmatmul.mubr.msk.f32.vlgmr.msra.gmra.mrb[8].mxu0 %vm618_vm1, %v4093_v58 }
0x1148   : > { %2925 = vmatprep.mubr.msk.f32.mxu0 %vm618_vm1, %v4111_v25  ;;  %3114 = vmatpush3.bf16.msra.mxu0 %v4201_v11 }
0x1149   : > { %3115 = vmatprep.subr.bf16.mxu0 %v3689_v0 }
0x114b   : > { %2926 = vmatmul.mubr.msk.f32.gmra.mrb[10].mxu0 %vm618_vm1, %v4129_v49 }
0x114c   : > { %2928 = vmatprep.mubr.msk.f32.mxu0 %vm618_vm1, %v1114_v16  ;;  %3117 = vmatpush3.bf16.msra.mxu0 %v4205_v15 }
0x114d   : > { %3124 = vmatprep.subr.bf16.mxu0 %v3689_v0 }
0x114f   : > { %2929 = vmatmul.mubr.msk.f32.gmra.mrb[12].mxu0 %vm618_vm1, %v1213_v46 }
0x1212   : > { %v1282_v47 = vpop.f32.mrb[6].mxu0 }
0x1213   : > { %v1283_v35 = vadd.f32 %v4058_v10, %v1282_v47  ;;  %v2902_v48 = vpop.f32.mrb[7].mxu0 }
0x1215   : > { %1292 = vrot.lane.b32.xlu1 %v1283_v35, %s3693_s14  ;;  %v1286_v56 = vadd.f32 %v1283_v35, %v611_v55 }
0x1217   : > { %v1287_v57 = vmul.f32 0.5, %v1286_v56 }
0x1219   : > { %3327 = vtanh.f32 %v1287_v57 }
0x121a   : > { %v4187_v50 = vpop.f32.mrb[8].mxu0 }
0x121b   : > { %v1502_v51 = vpop.f32.mrb[9].mxu0  ;;  %v1508_v12 = vadd.f32 %v4187_v50, %v4232_v9 }
0x121c   : > { %v1503_v29 = vadd.f32 %v4232_v9, %v1502_v51 }
0x121e   : > { %v4189_v58 = vpop.f32.mrb[10].mxu0 }
0x121f   : > { %v4191_v52 = vpop.f32.mrb[11].mxu0 }
0x1222   : > { %v4193_v25 = vpop.f32.mrb[12].mxu0 }
0x1223   : > { %v4195_v49 = vpop.f32.mrb[13].mxu0  ;;  %v3328_v59 = vpop.eup %3327 }
0x1224   : > { %v1289_v60 = vadd.f32 1.0, %v3328_v59 }
0x1226   : > { %v1290_v61 = vmul.f32 0.5, %v1289_v60 }
0x1228   : > { %v1302_v16 = vsub.f32 1.0, %v1290_v61  ;;  %v1308_v19 = vmul.f32 %v1290_v61, %v1210_v41 }
0x1287   : > { %v1293_v62 = vpop.permute.xlu1 %1292 }
0x1288   : > { %v1295_v63 = vmul.f32 %v1293_v62, %v1290_v61 }
0x128a   : > { %1297 = vrot.lane.b32.xlu1 %v1295_v63, %s3693_s14 }
0x12fc   : > { %v1298_v2 = vpop.permute.xlu1 %1297 }
0x12fd   : > { %v1300_v3 = vadd.f32 %v1298_v2, %v611_v55 }
0x12ff   : > { %3329 = vtanh.f32 %v1300_v3 }
0x1309   : > { %v3330_v4 = vpop.eup %3329 }
0x130a   : > { %1304 = vrot.lane.b32.xlu0 %v3330_v4, %s3694_s6 }
0x137c   : > { %v1305_v18 = vpop.permute.xlu0 %1304 }
0x137d   : > { %v1307_v20 = vmul.f32 %v1305_v18, %v1302_v16 }
0x137f   : > { %v4209_v21 = vadd.f32 %v1308_v19, %v1307_v20 }
0x1381   : > { %1311 = vrot.lane.b32.xlu1 %v4209_v21, %s3694_s6 }
0x13f3   : > { %v1312_v22 = vpop.permute.xlu1 %1311 }
0x13f4   : > { %2912 = vmatmul.mubr.msk.f32.vlgmr.msra.gmra.mrb[6].mxu1 %vm618_vm1, %v1312_v22  ;;  %2931 = vmatprep.mubr.msk.f32.mxu0 %vm618_vm1, %v1312_v22 }
0x13f5   : > { %3102 = vmatpush3.bf16.msra.mxu1 %v4201_v11  ;;  %2942 = vmatprep.mubr.msk.f32.mxu1 %vm3690_vm0, %v3691_v1 }
0x13f6   : > { %3103 = vmatprep.subr.bf16.mxu1 %v3689_v0 }
0x13f9   : > { %3105 = vmatpush3.bf16.msra.mxu1 %v4205_v15 }
0x13fa   : > { %3106 = vmatprep.subr.bf16.mxu1 %v3689_v0 }
0x13fc   : > { %2943 = vmatmul.mubr.f32.vlgmr.msra.gmra.mrb[8].mxu1 %v3691_v1 }
0x13fd   : > { %3108 = vmatpush3.bf16.msra.mxu1 %v4201_v11  ;;  %2953 = vmatprep.mubr.msk.f32.mxu1 %vm3690_vm0, %v3691_v1 }
0x13fe   : > { %3109 = vmatprep.subr.bf16.mxu1 %v3689_v0 }
0x1401   : > { %3111 = vmatpush3.bf16.msra.mxu1 %v4205_v15 }
0x1402   : > { %3118 = vmatprep.subr.bf16.mxu1 %v3689_v0 }
0x14c7   : > { %v1381_v6 = vpop.f32.mrb[6].mxu1 }
0x14c8   : > { %v2913_v23 = vpop.f32.mrb[7].mxu1  ;;  %v1382_v47 = vadd.f32 %v4058_v10, %v1381_v6 }
0x14cf   : > { %v1607_v26 = vpop.f32.mrb[8].mxu1 }
0x14d0   : > { %v1608_v27 = vadd.f32 %v4228_v24, %v1607_v26  ;;  %v2944_v28 = vpop.f32.mrb[9].mxu1 }
0x14d2   : > { %1617 = vrot.lane.b32.xlu0 %v1608_v27, %s3693_s14  ;;  %v1611_v30 = vadd.f32 %v1608_v27, %v1503_v29 }
0x14d4   : > { %v1612_v31 = vmul.f32 0.5, %v1611_v30 }
0x14d6   : > { %3331 = vtanh.f32 %v1612_v31 }
0x14e0   : > { %v3332_v32 = vpop.eup %3331 }
0x14e1   : > { %v1614_v33 = vadd.f32 1.0, %v3332_v32 }
0x14e3   : > { %v1615_v34 = vmul.f32 0.5, %v1614_v33 }
0x14e5   : > { %v1627_v42 = vsub.f32 1.0, %v1615_v34  ;;  %v1633_v44 = vmul.f32 0.0, %v1615_v34 }
0x1544   : > { %v1618_v36 = vpop.permute.xlu0 %1617 }
0x1545   : > { %v1620_v37 = vmul.f32 %v1618_v36, %v1615_v34 }
0x1547   : > { %1622 = vrot.lane.b32.xlu1 %v1620_v37, %s3693_s14 }
0x15b9   : > { %v1623_v39 = vpop.permute.xlu1 %1622 }
0x15ba   : > { %v1625_v40 = vadd.f32 %v1623_v39, %v1503_v29  ;;  %v1513_v39 = vadd.f32 %v4232_v9, %v4191_v52 }
0x15bc   : > { %3333 = vtanh.f32 %v1625_v40 }
0x15c6   : > { %v3334_v41 = vpop.eup %3333 }
0x15c7   : > { %1629 = vrot.lane.b32.xlu0 %v3334_v41, %s3694_s6 }
0x15cb   : > { %613 = vperm.xlu0 %3302, %v4038_v8  }
0x1639   : > { %v1630_v43 = vpop.permute.xlu0 %1629 }
0x163a   : > { %v1632_v45 = vmul.f32 %v1630_v43, %v1627_v42 }
0x163c   : > { %v1634_v46 = vadd.f32 %v1633_v44, %v1632_v45 }
0x163e   : > { %1636 = vrot.lane.b32.xlu1 %v1634_v46, %s3694_s6 }
0x1642   : > { %1391 = vrot.lane.b32.xlu1 %v1382_v47, %s3693_s14 }
0x164a   : > { %v614_v35 = vpop.permute.xlu0 %613 }
0x164b   : > { %v616_v48 = vmul.f32 %v4065_v14, %v614_v35 }
0x164d   : > { %v617_v51 = vadd.f32 %v4068_v17, %v616_v48 }
0x164f   : > { %v1385_v53 = vadd.f32 %v1382_v47, %v617_v51 }
0x1651   : > { %v1386_v54 = vmul.f32 0.5, %v1385_v53 }
0x1653   : > { %3335 = vtanh.f32 %v1386_v54 }
0x165d   : > { %v3336_v8 = vpop.eup %3335 }
0x165e   : > { %v1388_v55 = vadd.f32 1.0, %v3336_v8 }
0x1660   : > { %v1389_v10 = vmul.f32 0.5, %v1388_v55 }
0x1662   : > { %v1401_v2 = vsub.f32 1.0, %v1389_v10  ;;  %v1407_v4 = vmul.f32 %v1389_v10, %v4209_v21 }
0x16b0   : > { %v1637_v56 = vpop.permute.xlu1 %1636 }
0x16b1   : > { %2954 = vmatmul.mubr.msk.f32.vlgmr.msra.gmra.mrb[10].mxu1 %vm618_vm1, %v1637_v56 }
0x16b2   : > { %3120 = vmatpush3.bf16.msra.mxu1 %v4201_v11  ;;  %2975 = vmatprep.mubr.msk.f32.mxu1 %vm3690_vm0, %v3691_v1 }
0x16b3   : > { %3121 = vmatprep.subr.bf16.mxu1 %v3689_v0 }
0x16b4   : > { %v1392_v57 = vpop.permute.xlu1 %1391 }
0x16b5   : > { %v1394_v14 = vmul.f32 %v1392_v57, %v1389_v10 }
0x16b6   : > { %3123 = vmatpush3.bf16.msra.mxu1 %v4205_v15 }
0x16b7   : > { %1396 = vrot.lane.b32.xlu0 %v1394_v14, %s3693_s14  ;;  %3130 = vmatprep.subr.bf16.mxu1 %v3689_v0  ;;  %v1518_v14 = vadd.f32 %v4189_v58, %v4232_v9 }
0x1729   : > { %v1397_v17 = vpop.permute.xlu0 %1396 }
0x172a   : > { %v1399_v59 = vadd.f32 %v1397_v17, %v617_v51 }
0x172c   : > { %3337 = vtanh.f32 %v1399_v59 }
0x1736   : > { %v3338_v60 = vpop.eup %3337 }
0x1737   : > { %1403 = vrot.lane.b32.xlu0 %v3338_v60, %s3694_s6 }
0x1784   : > { %v1706_v61 = vpop.f32.mrb[10].mxu1 }
0x1785   : > { %v1707_v62 = vadd.f32 %v4228_v24, %v1706_v61  ;;  %v2955_v63 = vpop.f32.mrb[11].mxu1 }
0x1787   : > { %1716 = vrot.lane.b32.xlu1 %v1707_v62, %s3693_s14  ;;  %v1710_v13 = vadd.f32 %v1707_v62, %v1508_v12 }
0x1789   : > { %v1711_v16 = vmul.f32 0.5, %v1710_v13 }
0x178b   : > { %3339 = vtanh.f32 %v1711_v16 }
0x1795   : > { %v3340_v18 = vpop.eup %3339 }
0x1796   : > { %v1713_v19 = vadd.f32 1.0, %v3340_v18 }
0x1798   : > { %v1714_v20 = vmul.f32 0.5, %v1713_v19 }
0x179a   : > { %v1726_v27 = vsub.f32 1.0, %v1714_v20  ;;  %v1732_v29 = vmul.f32 %v1714_v20, %v1634_v46 }
0x17a9   : > { %v1404_v3 = vpop.permute.xlu0 %1403 }
0x17aa   : > { %v1406_v5 = vmul.f32 %v1404_v3, %v1401_v2 }
0x17ac   : > { %v1408_v7 = vadd.f32 %v1407_v4, %v1406_v5 }
0x17ae   : > { %1432 = vrot.lane.b32.xlu0 %v1408_v7, %s3694_s6 }
0x17f9   : > { %v1717_v22 = vpop.permute.xlu1 %1716 }
0x17fa   : > { %v1719_v6 = vmul.f32 %v1717_v22, %v1714_v20 }
0x17fc   : > { %1721 = vrot.lane.b32.xlu1 %v1719_v6, %s3693_s14  ;;  %v1523_v6 = vadd.f32 %v4232_v9, %v4195_v49 }
0x1820   : > { %v1433_v23 = vpop.permute.xlu0 %1432 }
0x1821   : > { %2932 = vmatmul.mubr.msk.f32.gmra.mrb[14].mxu0 %vm618_vm1, %v1433_v23 }
0x1822   : > { %2964 = vmatprep.mubr.msk.f32.mxu0 %vm3690_vm0, %v3691_v1 }
0x186e   : > { %v1722_v21 = vpop.permute.xlu1 %1721 }
0x186f   : > { %v1724_v26 = vadd.f32 %v1722_v21, %v1508_v12 }
0x1871   : > { %3341 = vtanh.f32 %v1724_v26 }
0x187b   : > { %v3342_v50 = vpop.eup %3341 }
0x187c   : > { %1728 = vrot.lane.b32.xlu1 %v3342_v50, %s3694_s6 }
0x18ee   : > { %v1729_v28 = vpop.permute.xlu1 %1728 }
0x18ef   : > { %v1731_v30 = vmul.f32 %v1729_v28, %v1726_v27 }
0x18f1   : > { %v1733_v31 = vadd.f32 %v1732_v29, %v1731_v30 }
0x18f3   : > { %1735 = vrot.lane.b32.xlu1 %v1733_v31, %s3694_s6 }
0x18f4   : > { %v4264_v32 = vpop.f32.mrb[14].mxu0 }
0x18f5   : > { %v4266_v33 = vpop.f32.mrb[15].mxu0 }
0x1965   : > { %v1736_v34 = vpop.permute.xlu1 %1735 }
0x1966   : > { %2965 = vmatmul.mubr.msk.f32.vlgmr.msra.gmra.mrb[16].mxu0 %vm618_vm1, %v1736_v34 }
0x1967   : > { %3126 = vmatpush3.bf16.msra.mxu0 %v4201_v11  ;;  %2986 = vmatprep.mubr.msk.f32.mxu0 %vm3690_vm0, %v3691_v1 }
0x1968   : > { %3127 = vmatprep.subr.bf16.mxu0 %v3689_v0 }
0x196b   : > { %3129 = vmatpush3.bf16.msra.mxu0 %v4205_v15 }
0x196c   : > { %3136 = vmatprep.subr.bf16.mxu0 %v3689_v0 }
0x1a39   : > { %v1805_v36 = vpop.f32.mrb[16].mxu0 }
0x1a3a   : > { %v1806_v37 = vadd.f32 %v4228_v24, %v1805_v36  ;;  %v2966_v38 = vpop.f32.mrb[17].mxu0 }
0x1a3c   : > { %1815 = vrot.lane.b32.xlu0 %v1806_v37, %s3693_s14  ;;  %v1809_v40 = vadd.f32 %v1806_v37, %v1513_v39 }
0x1a3e   : > { %v1810_v41 = vmul.f32 0.5, %v1809_v40 }
0x1a40   : > { %3343 = vtanh.f32 %v1810_v41 }
0x1a4a   : > { %v3344_v42 = vpop.eup %3343 }
0x1a4b   : > { %v1812_v43 = vadd.f32 1.0, %v3344_v42 }
0x1a4d   : > { %v1813_v44 = vmul.f32 0.5, %v1812_v43 }
0x1a4f   : > { %v1825_v51 = vsub.f32 1.0, %v1813_v44  ;;  %v1831_v54 = vmul.f32 %v1813_v44, %v1733_v31 }
0x1aae   : > { %v1816_v45 = vpop.permute.xlu0 %1815 }
0x1aaf   : > { %v1818_v46 = vmul.f32 %v1816_v45, %v1813_v44  ;;  %v1528_v44 = vadd.f32 %v4193_v25, %v4232_v9 }
0x1ab1   : > { %1820 = vrot.lane.b32.xlu1 %v1818_v46, %s3693_s14 }
0x1b23   : > { %v1821_v47 = vpop.permute.xlu1 %1820 }
0x1b24   : > { %v1823_v35 = vadd.f32 %v1821_v47, %v1513_v39 }
0x1b26   : > { %3345 = vtanh.f32 %v1823_v35 }
0x1b30   : > { %v3346_v48 = vpop.eup %3345 }
0x1b31   : > { %1827 = vrot.lane.b32.xlu0 %v3346_v48, %s3694_s6 }
0x1ba3   : > { %v1828_v53 = vpop.permute.xlu0 %1827 }
0x1ba4   : > { %v1830_v52 = vmul.f32 %v1828_v53, %v1825_v51 }
0x1ba6   : > { %v1832_v8 = vadd.f32 %v1831_v54, %v1830_v52 }
0x1ba8   : > { %1834 = vrot.lane.b32.xlu1 %v1832_v8, %s3694_s6 }
0x1c1a   : > { %v1835_v55 = vpop.permute.xlu1 %1834 }
0x1c1b   : > { %2976 = vmatmul.mubr.msk.f32.vlgmr.msra.gmra.mrb[12].mxu1 %vm618_vm1, %v1835_v55 }
0x1c1c   : > { %3132 = vmatpush3.bf16.msra.mxu1 %v4201_v11  ;;  %2997 = vmatprep.mubr.msk.f32.mxu1 %vm3690_vm0, %v3691_v1 }
0x1c1d   : > { %3133 = vmatprep.subr.bf16.mxu1 %v3689_v0 }
0x1c20   : > { %3135 = vmatpush3.bf16.msra.mxu1 %v4205_v15 }
0x1c21   : > { %3142 = vmatprep.subr.bf16.mxu1 %v3689_v0 }
0x1cee   : > { %v1904_v56 = vpop.f32.mrb[12].mxu1 }
0x1cef   : > { %v1905_v10 = vadd.f32 %v4228_v24, %v1904_v56  ;;  %v2977_v57 = vpop.f32.mrb[13].mxu1 }
0x1cf1   : > { %1914 = vrot.lane.b32.xlu0 %v1905_v10, %s3693_s14  ;;  %v1908_v17 = vadd.f32 %v1905_v10, %v1518_v14 }
0x1cf3   : > { %v1909_v59 = vmul.f32 0.5, %v1908_v17 }
0x1cf5   : > { %3347 = vtanh.f32 %v1909_v59  ;;  %v1533_v59 = vadd.f32 %v4232_v9, %v4266_v33 }
0x1cff   : > { %v3348_v60 = vpop.eup %3347 }
0x1d00   : > { %v1911_v61 = vadd.f32 1.0, %v3348_v60 }
0x1d02   : > { %v1912_v62 = vmul.f32 0.5, %v1911_v61 }
0x1d04   : > { %v1924_v7 = vsub.f32 1.0, %v1912_v62  ;;  %v1930_v13 = vmul.f32 %v1912_v62, %v1832_v8 }
0x1d63   : > { %v1915_v63 = vpop.permute.xlu0 %1914 }
0x1d64   : > { %v1917_v2 = vmul.f32 %v1915_v63, %v1912_v62 }
0x1d66   : > { %1919 = vrot.lane.b32.xlu1 %v1917_v2, %s3693_s14 }
0x1dd8   : > { %v1920_v3 = vpop.permute.xlu1 %1919 }
0x1dd9   : > { %v1922_v4 = vadd.f32 %v1920_v3, %v1518_v14 }
0x1ddb   : > { %3349 = vtanh.f32 %v1922_v4 }
0x1de5   : > { %v3350_v5 = vpop.eup %3349 }
0x1de6   : > { %1926 = vrot.lane.b32.xlu0 %v3350_v5, %s3694_s6 }
0x1e58   : > { %v1927_v12 = vpop.permute.xlu0 %1926 }
0x1e59   : > { %v1929_v58 = vmul.f32 %v1927_v12, %v1924_v7 }
0x1e5b   : > { %v1931_v16 = vadd.f32 %v1930_v13, %v1929_v58 }
0x1e5d   : > { %1933 = vrot.lane.b32.xlu1 %v1931_v16, %s3694_s6 }
0x1ecf   : > { %v1934_v18 = vpop.permute.xlu1 %1933 }
0x1ed0   : > { %2987 = vmatmul.mubr.msk.f32.vlgmr.msra.gmra.mrb[18].mxu0 %vm618_vm1, %v1934_v18 }
0x1ed1   : > { %3138 = vmatpush3.bf16.msra.mxu0 %v4201_v11  ;;  %3008 = vmatprep.mubr.msk.f32.mxu0 %vm3690_vm0, %v3691_v1 }
0x1ed2   : > { %3139 = vmatprep.subr.bf16.mxu0 %v3689_v0 }
0x1ed5   : > { %3141 = vmatpush3.bf16.msra.mxu0 %v4205_v15 }
0x1ed6   : > { %3148 = vmatprep.subr.bf16.mxu0 %v3689_v0 }
0x1fa3   : > { %v2003_v19 = vpop.f32.mrb[18].mxu0 }
0x1fa4   : > { %v2004_v20 = vadd.f32 %v4228_v24, %v2003_v19  ;;  %v2988_v22 = vpop.f32.mrb[19].mxu0 }
0x1fa6   : > { %2013 = vrot.lane.b32.xlu0 %v2004_v20, %s3693_s14  ;;  %v2007_v23 = vadd.f32 %v2004_v20, %v1523_v6 }
0x1fa8   : > { %v2008_v21 = vmul.f32 0.5, %v2007_v23  ;;  %v1538_v23 = vadd.f32 %v4264_v32, %v4232_v9 }
0x1faa   : > { %3351 = vtanh.f32 %v2008_v21 }
0x1fb4   : > { %v3352_v26 = vpop.eup %3351 }
0x1fb5   : > { %v2010_v50 = vadd.f32 1.0, %v3352_v26 }
0x1fb7   : > { %v2011_v27 = vmul.f32 0.5, %v2010_v50 }
0x1fb9   : > { %v2023_v36 = vsub.f32 1.0, %v2011_v27  ;;  %v2029_v38 = vmul.f32 %v2011_v27, %v1931_v16 }
0x2018   : > { %v2014_v28 = vpop.permute.xlu0 %2013 }
0x2019   : > { %v2016_v29 = vmul.f32 %v2014_v28, %v2011_v27 }
0x201b   : > { %2018 = vrot.lane.b32.xlu1 %v2016_v29, %s3693_s14 }
0x208d   : > { %v2019_v30 = vpop.permute.xlu1 %2018 }
0x208e   : > { %v2021_v31 = vadd.f32 %v2019_v30, %v1523_v6 }
0x2090   : > { %3353 = vtanh.f32 %v2021_v31 }
0x209a   : > { %v3354_v34 = vpop.eup %3353 }
0x209b   : > { %2025 = vrot.lane.b32.xlu0 %v3354_v34, %s3694_s6  ;;  %v2329_v34 = vld [vmem:[#allocation13 + $0x8] sm:$0xff] }
0x210d   : > { %v2026_v37 = vpop.permute.xlu0 %2025 }
0x210e   : > { %v2028_v49 = vmul.f32 %v2026_v37, %v2023_v36  ;;  %v2330_v36 = vld [vmem:[#allocation13 + $0x10] sm:$0xff] }
0x2110   : > { %v2030_v39 = vadd.f32 %v2029_v38, %v2028_v49  ;;  %v2331_v38 = vld [vmem:[#allocation13 + $0x18] sm:$0xff] }
0x2111   : > { %v3152_v9 = vpack.c.bf16 %v2331_v38, %v2330_v36  ;;  %v2415_v49 = vld [vmem:[%s4421_s11] sm:$0xff] }
0x2112   : > { %2032 = vrot.lane.b32.xlu1 %v2030_v39, %s3694_s6 }
0x2184   : > { %v2033_v40 = vpop.permute.xlu1 %2032 }
0x2185   : > { %2998 = vmatmul.mubr.msk.f32.vlgmr.msra.gmra.mrb[14].mxu1 %vm618_vm1, %v2033_v40 }
0x2186   : > { %3144 = vmatpush3.bf16.msra.mxu1 %v4201_v11  ;;  %3019 = vmatprep.mubr.msk.f32.mxu1 %vm3690_vm0, %v3691_v1 }
0x2187   : > { %3145 = vmatprep.subr.bf16.mxu1 %v3689_v0 }
0x218a   : > { %3147 = vmatpush3.bf16.msra.mxu1 %v4205_v15 }
0x218b   : > { %3154 = vmatprep.subr.bf16.mxu1 %v3689_v0 }
0x2258   : > { %v2102_v41 = vpop.f32.mrb[14].mxu1 }
0x2259   : > { %v2103_v42 = vadd.f32 %v4228_v24, %v2102_v41  ;;  %v2999_v43 = vpop.f32.mrb[15].mxu1 }
0x225b   : > { %2112 = vrot.lane.b32.xlu0 %v2103_v42, %s3693_s14  ;;  %v2106_v45 = vadd.f32 %v2103_v42, %v1528_v44 }
0x225d   : > { %v2107_v11 = vmul.f32 0.5, %v2106_v45 }
0x225f   : > { %3355 = vtanh.f32 %v2107_v11 }
0x2269   : > { %v3356_v46 = vpop.eup %3355 }
0x226a   : > { %v2109_v47 = vadd.f32 1.0, %v3356_v46  ;;  %v2417_v46 = vld [vmem:[%s4421_s11 + $0x10] sm:$0xff] }
0x226c   : > { %v2110_v35 = vmul.f32 0.5, %v2109_v47  ;;  %v2418_v47 = vld [vmem:[%s4421_s11 + $0x18] sm:$0xff] }
0x226e   : > { %v2122_v52 = vsub.f32 1.0, %v2110_v35  ;;  %v2128_v55 = vmul.f32 %v2110_v35, %v2030_v39  ;;  %v2416_v39 = vld [vmem:[%s4421_s11 + $0x8] sm:$0xff] }
0x226f   : > { %v3155_v40 = vpack.c.bf16 %v2416_v39, %v2415_v49 }
0x22cd   : > { %v2113_v48 = vpop.permute.xlu0 %2112 }
0x22ce   : > { %v2115_v51 = vmul.f32 %v2113_v48, %v2110_v35  ;;  %v3158_v35 = vpack.c.bf16 %v2418_v47, %v2417_v46 }
0x22d0   : > { %2117 = vrot.lane.b32.xlu1 %v2115_v51, %s3693_s14 }
0x2342   : > { %v2118_v15 = vpop.permute.xlu1 %2117 }
0x2343   : > { %v2120_v53 = vadd.f32 %v2118_v15, %v1528_v44 }
0x2345   : > { %3357 = vtanh.f32 %v2120_v53 }
0x234f   : > { %v3358_v54 = vpop.eup %3357 }
0x2350   : > { %2124 = vrot.lane.b32.xlu0 %v3358_v54, %s3694_s6  ;;  %v2500_v54 = vlaneseq }
0x23c2   : > { %v2125_v8 = vpop.permute.xlu0 %2124 }
0x23c3   : > { %v2127_v25 = vmul.f32 %v2125_v8, %v2122_v52  ;;  %v2718_v52 = vld [vmem:[%s4422_s12] ss:$0 sm:$0xff]  ;;  %v2501_v8 = vand.u32 127, %v2500_v54 }
0x23c5   : > { %v2129_v56 = vadd.f32 %v2128_v55, %v2127_v25  ;;  %vm2502_vm2 = vcmp.lt.s32.totalorder %v2501_v8, 10 }
0x23c7   : > { %2131 = vrot.lane.b32.xlu1 %v2129_v56, %s3694_s6 }
0x2439   : > { %v2132_v10 = vpop.permute.xlu1 %2131 }
0x243a   : > { %3009 = vmatmul.mubr.msk.f32.vlgmr.msra.gmra.mrb[20].mxu0 %vm618_vm1, %v2132_v10 }
0x243b   : > { %3030 = vmatprep.mubr.msk.f32.mxu0 %vm3690_vm0, %v3691_v1 }
0x250d   : > { %v2201_v57 = vpop.f32.mrb[20].mxu0 }
0x250e   : > { %v2202_v14 = vadd.f32 %v4228_v24, %v2201_v57  ;;  %v3010_v17 = vpop.f32.mrb[21].mxu0 }
0x2510   : > { %2211 = vrot.lane.b32.xlu0 %v2202_v14, %s3693_s14  ;;  %v2205_v60 = vadd.f32 %v2202_v14, %v1533_v59 }
0x2512   : > { %v2206_v61 = vmul.f32 0.5, %v2205_v60 }
0x2514   : > { %3359 = vtanh.f32 %v2206_v61 }
0x251e   : > { %v3360_v62 = vpop.eup %3359 }
0x251f   : > { %v2208_v63 = vadd.f32 1.0, %v3360_v62 }
0x2521   : > { %v2209_v2 = vmul.f32 0.5, %v2208_v63 }
0x2523   : > { %v2221_v13 = vsub.f32 1.0, %v2209_v2  ;;  %v2227_v16 = vmul.f32 %v2209_v2, %v2129_v56 }
0x2582   : > { %v2212_v3 = vpop.permute.xlu0 %2211 }
0x2583   : > { %v2214_v4 = vmul.f32 %v2212_v3, %v2209_v2 }
0x2585   : > { %2216 = vrot.lane.b32.xlu1 %v2214_v4, %s3693_s14 }
0x25f7   : > { %v2217_v5 = vpop.permute.xlu1 %2216 }
0x25f8   : > { %v2219_v7 = vadd.f32 %v2217_v5, %v1533_v59 }
0x25fa   : > { %3361 = vtanh.f32 %v2219_v7 }
0x2604   : > { %v3362_v12 = vpop.eup %3361 }
0x2605   : > { %2223 = vrot.lane.b32.xlu0 %v3362_v12, %s3694_s6 }
0x2677   : > { %v2224_v58 = vpop.permute.xlu0 %2223 }
0x2678   : > { %v2226_v33 = vmul.f32 %v2224_v58, %v2221_v13 }
0x267a   : > { %v2228_v18 = vadd.f32 %v2227_v16, %v2226_v33 }
0x267c   : > { %2230 = vrot.lane.b32.xlu1 %v2228_v18, %s3694_s6 }
0x26ee   : > { %v2231_v19 = vpop.permute.xlu1 %2230 }
0x26ef   : > { %3020 = vmatmul.mubr.msk.f32.vlgmr.msra.gmra.mrb[16].mxu1 %vm618_vm1, %v2231_v19 }
0x26f0   : > { %3041 = vmatprep.mubr.msk.f32.mxu1 %vm3690_vm0, %v3691_v1  ;;  %3156 = vmatpush3.bf16.msra.mxu1 %v3155_v40 }
0x26f1   : > { %3157 = vmatprep.subr.bf16.mxu1 %v3689_v0 }
0x26f4   : > { %3159 = vmatpush3.bf16.msra.mxu1 %v3158_v35 }
0x27c2   : > { %v2300_v20 = vpop.f32.mrb[16].mxu1 }
0x27c3   : > { %v2301_v22 = vadd.f32 %v4228_v24, %v2300_v20  ;;  %v3021_v6 = vpop.f32.mrb[17].mxu1  ;;  %v2328_v24 = vld [vmem:[#allocation13] sm:$0xff] }
0x27c4   : > { %v3149_v37 = vpack.c.bf16 %v2329_v34, %v2328_v24 }
0x27c5   : > { %2310 = vrot.lane.b32.xlu0 %v2301_v22, %s3693_s14  ;;  %v2304_v21 = vadd.f32 %v2301_v22, %v1538_v23 }
0x27c6   : > { %3150 = vmatpush3.bf16.msra.mxu0 %v3149_v37 }
0x27c7   : > { %v2305_v26 = vmul.f32 0.5, %v2304_v21  ;;  %3151 = vmatprep.subr.bf16.mxu0 %v3689_v0  ;;  %v2716_v0 = vld [vmem:[#allocation14] ss:$0 sm:$0xff] }
0x27c9   : > { %3363 = vtanh.f32 %v2305_v26 }
0x27ca   : > { %3153 = vmatpush3.bf16.msra.mxu0 %v3152_v9 }
0x27d3   : > { %v3364_v50 = vpop.eup %3363 }
0x27d4   : > { %v2307_v27 = vadd.f32 1.0, %v3364_v50 }
0x27d6   : > { %v2308_v28 = vmul.f32 0.5, %v2307_v27 }
0x27d8   : > { %v2320_v41 = vsub.f32 1.0, %v2308_v28  ;;  %v2326_v43 = vmul.f32 %v2308_v28, %v2228_v18 }
0x2837   : > { %v2311_v29 = vpop.permute.xlu0 %2310 }
0x2838   : > { %v2313_v30 = vmul.f32 %v2311_v29, %v2308_v28 }
0x283a   : > { %2315 = vrot.lane.b32.xlu1 %v2313_v30, %s3693_s14 }
0x28ac   : > { %v2316_v1 = vpop.permute.xlu1 %2315 }
0x28ad   : > { %v2318_v31 = vadd.f32 %v2316_v1, %v1538_v23 }
0x28af   : > { %3365 = vtanh.f32 %v2318_v31 }
0x28b9   : > { %v3366_v32 = vpop.eup %3365 }
0x28ba   : > { %2322 = vrot.lane.b32.xlu0 %v3366_v32, %s3694_s6 }
0x292c   : > { %v2323_v42 = vpop.permute.xlu0 %2322 }
0x292d   : > { %v2325_v44 = vmul.f32 %v2323_v42, %v2320_v41 }
0x292f   : > { %v2327_v45 = vadd.f32 %v2326_v43, %v2325_v44 }
0x2931   : > { %2340 = vrot.lane.b32.xlu1 %v2327_v45, %s3694_s6 }
0x29a3   : > { %v2341_v11 = vpop.permute.xlu1 %2340 }
0x29a4   : > { %3031 = vmatmul.mubr.msk.f32.vlgmr.msra.gmra.mrb[22].mxu0 %vm618_vm1, %v2341_v11 }
0x2a77   : > { %v2410_v48 = vpop.f32.mrb[22].mxu0 }
0x2a78   : > { %v2411_v51 = vadd.f32 %v2716_v0, %v2410_v48  ;;  %v3032_v15 = vpop.f32.mrb[23].mxu0 }
0x2a7a   : > { %v2414_v53 = vmax.f32 %v2411_v51, 0.0 }
0x2a7c   : > { %3042 = vmatmul.mubr.msk.f32.vlgmr.msra.gmra.mrb[18].mxu1 %vm618_vm1, %v2414_v53 }
0x2b4f   : > { %v2495_v55 = vpop.f32.mrb[18].mxu1 }
0x2b50   : > { %v2496_v25 = vadd.f32 %v2718_v52, %v2495_v55  ;;  %v3043_v56 = vpop.f32.mrb[19].mxu1 }
0x2b52   : > { %v2499_v10 = vmax.f32 %v2496_v25, 0.0 }
0x2b54   : > { %v2503_v57 = vsel %vm2502_vm2, %v2499_v10, -1e+30 }
0x2b55   : > { %2504 = vmax.xlane.f32.xlu0 %v2503_v57 }
0x2be2   : > { %v2505_v14 = vpop.xlane.xlu0 %2504 }
0x2be3   : > { %v2506_v17 = vsub.f32 %v2503_v57, %v2505_v14 }
0x2be5   : > { %v2507_v59 = vmul.f32 1.442695, %v2506_v17 }
0x2be7   : > { %3367 = vpow2.f32 %v2507_v59 }
0x2bf1   : > { %v3368_v60 = vpop.eup %3367 }
0x2bf2   : > { %2509 = vadd.xlane.f32.xlu1 %v3368_v60 }
0x2c7f   : > { %v2510_v61 = vpop.xlane.xlu1 %2509 }
0x2c80   : > { %3369 = vlog2.f32 %v2510_v61 }
0x2c8a   : > { %v3370_v62 = vpop.eup %3369 }
0x2c8b   : > { %v2512_v63 = vmul.f32 0.6931472, %v3370_v62 }
0x2c8d   : > { %v2513_v2 = vsub.f32 %v2506_v17, %v2512_v63 }
0x2c8f   : > { %2514 = vst [vmem:[%s538_s24] sm:$0xff] %v2513_v2 }
0x2c90   : > { %3608 = shalt.err (!%p3605_p9)
}
0x2c91   : > { %s3609_s15 = scalar_lea.hbm %s4368_s27, 128  ;;  %s3613_s2 = scalar_lea.hbm %s4469_s30, 256 }
0x2c92   : > { %p3610_p12 = scmp.ne.s32.totalorder %s4368_s27, %s3609_s15  ;;  %p3614_p3 = scmp.lt.u32.totalorder %s4368_s27, %s4469_s30 }
0x2c93   : > { %p3615_p4 = scmp.lt.u32.totalorder %s3613_s2, %s3609_s15  ;;  %p3617_p8 = scmp.lt.u32.totalorder %s3609_s15, %s4368_s27 }
0x2c94   : > { %p3611_p10 = pnand %p3610_p12, %p4470_p11 }
0x2c95   : > { %p3616_p7 = por %p3615_p4, %p3614_p3 }
0x2c96   : > { %p3612_p2 = pneg %p3611_p10 }
0x2c97   : > { %p3618_p13 = por %p3617_p8, %p3616_p7 }
0x2c99   : > { %p3619_p1 = pnand %p3618_p13, %p3612_p2 }
0x2c9b   : > { %3622 = shalt.err (!%p3619_p1)
}
0x2c9c   : > { %3192 = dma.vmem_to_hbm [thread:$0]  (%p4470_p11), %s4370_s13, 128, %s4368_s27, %s2516_s25  }
0x2c9d PF: > { %s4471_s16 = sld [smem:[#allocation25_spill]]  ;;  %s4472_s28 = sld [smem:[#allocation23_spill]] }
0x2c9e   : > { %s4473_s24 = sld [smem:[#allocation28_spill]] }
0x2ca3   : > { %p3239_p0 = scmp.ge.s32.totalorder %s4471_s16, 2  ;;  %s2541_s21 = sand.u32 1, %s4472_s28  }
0x2ca4   : > { %p4474_p6 = scmp.ne.s32.totalorder %s4473_s24, 0  ;;  %s2542_s3 = scalar_lea.sflag [#allocation4], %s2541_s21 }
0x2ca6   : > { %p3220_p5 = pnand %p3239_p0, %p4474_p6 }
0x2ca8   : > { %3660 = dma.done.wait (!%p3220_p5), %s2542_s3, 128  }
0x2ca9   : > { %3662 = vsyncadd (!%p3220_p5), %s2542_s3, 4294967168  ;;  %s4475_s28 = sld [smem:[#allocation26_spill]]  ;;  %s4476_s20 = sld [smem:[#allocation24_spill]] }
0x2caa   : > { %s4477_s27 = sld [smem:[#allocation27_spill]]  ;;  %s4478_s25 = smov %s3669_s26 }
0x2caf   : > { %p28_p9 = scmp.ge.s32.totalorder %s4475_s28, 4   ;;  %s4479_s26 = smov %s4476_s20 }
0x2cb1   :  { %30 = sbr.rel (!%p28_p9) target bundleno = 13 (0xd), region = 140 }
0x2cb8   :  { %2547 = vsyncpa [#allocation3], 1 }
0x2cb9   :  { %2549 = vsyncpa [#allocation3 + $0x1], 1 }
0x2cba   :  { %2550 = vsyncpa [#allocation6], 1 }
0x2cbb   :  { %2551 = vsyncpa [#allocation9], 1 }
0x2cbc   :  { %2552 = vsyncpa [#allocation12], 1 }
0x2cbd   :  { %2553 = vsyncpa [#allocation15], 1 }
0x2cbe   :  { %2554 = vsyncpa [#allocation4], 1 }
0x2cbf   :  { %2556 = vsyncpa [#allocation4 + $0x1], 1 }

</bundles_post_ra>
